<compile_context>
chip_gen: v7x
topology: tpu7x:2x2x1
jax: 0.10.0
libtpu: 0.0.40
codegen_flags: <defaults>
</compile_context>

<pallas_src>
import functools

import jax
import jax.numpy as jnp
from jax.experimental import pallas as pl
from jax.experimental.pallas import tpu as pltpu


def _round_up(x, m):
    return (x + m - 1) // m * m


def _leaky_relu(x, slope=0.01):
    return jnp.where(x > 0, x, slope * x)


def affine_coupling_kernel(D_half, z_ref, w0_ref, wh_ref, wl_ref, b03_ref,
                           bl_ref, y_ref, ld_ref):
    """One (TILE_B, D) batch tile of the coupling layer."""
    z = z_ref[...]
    z_I = z[:, :D_half].astype(jnp.float32)
    z_II = z[:, D_half:].astype(jnp.float32)

    b03 = b03_ref[...]            # (4, 2H): biases of layers 0..3 (s || b)

    # Fused MLP (s-net || b-net).  NOTE(v5e): these K in {D_half, 16} GEMMs
    # under-utilize the MXU; a VPU broadcast-FMA form is possible, but at these
    # widths the kernel is HBM / per-step-overhead bound, so jnp.dot is kept.
    h = jnp.dot(z_I, w0_ref[...], preferred_element_type=jnp.float32) + b03[0:1, :]
    h = _leaky_relu(h)
    for i in range(3):
        h = jnp.dot(h, wh_ref[i], preferred_element_type=jnp.float32) + b03[i + 1:i + 2, :]
        h = _leaky_relu(h)
    h = jnp.dot(h, wl_ref[...], preferred_element_type=jnp.float32) + bl_ref[...]

    log_s = h[:, :D_half]         # (TILE_B, D_half)
    b = h[:, D_half:]             # (TILE_B, D_half)

    y_II = jnp.exp(log_s) * z_II + b
    # Single full-width store instead of two masked half-lane stores.
    y_ref[...] = jnp.concatenate([z_I, y_II], axis=-1).astype(y_ref.dtype)
    # TODO(synk): log_det kept as a (TILE_B, 1) column (masked store); a lane-dense
    # (1, TILE_B) layout would need an in-kernel transpose -- not worth it at D=4.
    ld_ref[...] = jnp.sum(log_s, axis=1, keepdims=True)


def _fuse_params(s_params, b_params):
    """Pack the two 5-layer nets into one fused MLP (block-diagonal weights)."""
    s_ws = [w for w, _ in s_params]
    s_bs = [jnp.reshape(b, (1, -1)) for _, b in s_params]
    b_ws = [w for w, _ in b_params]
    b_bs = [jnp.reshape(b, (1, -1)) for _, b in b_params]

    D_half, H = s_ws[0].shape
    dt = s_ws[0].dtype

    # Layer 0: (D_half, 2H) -- both nets read the same z_I.
    w0 = jnp.concatenate([s_ws[0], b_ws[0]], axis=1)
    # Hidden layers 1..3: block-diagonal (2H, 2H), stacked -> (3, 2H, 2H).
    zhh = jnp.zeros((H, H), dt)
    wh = jnp.stack([
        jnp.concatenate([
            jnp.concatenate([s_ws[i], zhh], axis=1),
            jnp.concatenate([zhh, b_ws[i]], axis=1)], axis=0)
        for i in range(1, 4)])
    # Output layer: block-diagonal (2H, 2*D_half); cols = [log_s | b].
    zhd = jnp.zeros((H, D_half), dt)
    wl = jnp.concatenate([
        jnp.concatenate([s_ws[4], zhd], axis=1),
        jnp.concatenate([zhd, b_ws[4]], axis=1)], axis=0)

    # Biases: layers 0..3 stacked (4, 2H); last layer (1, 2*D_half).
    b03 = jnp.concatenate(
        [jnp.concatenate([s_bs[i], b_bs[i]], axis=1) for i in range(4)], axis=0)
    bl = jnp.concatenate([s_bs[4], b_bs[4]], axis=1)
    return w0, wh, wl, b03, bl


def affine_coupling_forward(z, s_params, b_params, *, tile_b=512):
    """z: (B, D); s_params / b_params: lists of 5 (W, b) pairs each."""
    B, D = z.shape
    D_half = D // 2

    w0, wh, wl, b03, bl = _fuse_params(s_params, b_params)

    # Batch tiling: tile must be a multiple of 8 sublanes; pad ragged tail.
    tile_b = max(8, min(tile_b, _round_up(B, 8)))
    B_pad = _round_up(B, tile_b)
    z_p = z if B_pad == B else jnp.pad(z, ((0, B_pad - B), (0, 0)))

    kernel = functools.partial(affine_coupling_kernel, D_half)
    const2 = lambda i: (0, 0)      # params: same block every step -> VMEM-resident
    const3 = lambda i: (0, 0, 0)

    y, ld = pl.pallas_call(
        kernel,
        out_shape=(
            jax.ShapeDtypeStruct((B_pad, D), z.dtype),
            jax.ShapeDtypeStruct((B_pad, 1), jnp.float32),
        ),
        grid_spec=pltpu.PrefetchScalarGridSpec(
            num_scalar_prefetch=0,
            grid=(B_pad // tile_b,),
            in_specs=[
                pl.BlockSpec((tile_b, D), lambda i: (i, 0)),   # z tile
                pl.BlockSpec(w0.shape, const2),                # fused layer 0
                pl.BlockSpec(wh.shape, const3),                # fused hidden 1..3
                pl.BlockSpec(wl.shape, const2),                # fused output layer
                pl.BlockSpec(b03.shape, const2),               # biases 0..3
                pl.BlockSpec(bl.shape, const2),                # output bias
            ],
            out_specs=(
                pl.BlockSpec((tile_b, D), lambda i: (i, 0)),
                pl.BlockSpec((tile_b, 1), lambda i: (i, 0)),
            ),
        ),
        compiler_params=pltpu.CompilerParams(
            dimension_semantics=("parallel",)),
    )(z_p, w0, wh, wl, b03, bl)

    return y[:B], ld[:B, 0]


def _init_mlp_params(key, D_half):
    """Deterministic init mimicking nn.Linear's U(-1/sqrt(fan_in), 1/sqrt(fan_in))."""
    sizes = [(D_half, 8), (8, 8), (8, 8), (8, 8), (8, D_half)]
    params = []
    for fan_in, fan_out in sizes:
        key, kw, kb = jax.random.split(key, 3)
        bound = 1.0 / jnp.sqrt(fan_in)
        w = jax.random.uniform(kw, (fan_in, fan_out), jnp.float32, -bound, bound)
        b = jax.random.uniform(kb, (1, fan_out), jnp.float32, -bound, bound)
        params.append((w, b))
    return params, key


def _reference_forward(z, s_params, b_params):
    """Pure-JAX reference matching the PyTorch forward."""
    D = z.shape[1]
    D_half = D // 2
    z_I, z_II = z[:, :D_half], z[:, D_half:]

    def mlp(x, ps):
        h = x
        for i, (w, b) in enumerate(ps):
            h = h @ w + b
            if i < len(ps) - 1:
                h = jnp.where(h > 0, h, 0.01 * h)
        return h

    log_s = mlp(z_I, s_params)
    b = mlp(z_I, b_params)
    y_II = jnp.exp(log_s) * z_II + b
    y = jnp.concatenate([z_I, y_II], axis=1)
    return y, jnp.sum(log_s, axis=1)


if __name__ == "__main__":
    # D small per the module; B chosen to exercise the batch grid + ragged tail.
    B, D = 200, 4
    TILE_B = 128

    key = jax.random.PRNGKey(0)
    key, kz = jax.random.split(key)
    z = jax.random.normal(kz, (B, D), jnp.float32)

    s_params, key = _init_mlp_params(key, D // 2)
    b_params, key = _init_mlp_params(key, D // 2)

    y, log_det = affine_coupling_forward(z, s_params, b_params, tile_b=TILE_B)
    y = jax.block_until_ready(y)
    log_det = jax.block_until_ready(log_det)

    y_ref, ld_ref = _reference_forward(z, s_params, b_params)

    assert y.shape == (B, D)
    assert log_det.shape == (B,)
    assert jnp.allclose(y, y_ref, atol=1e-5, rtol=1e-5)
    assert jnp.allclose(log_det, ld_ref, atol=1e-5, rtol=1e-5)

    print("KERNEL_OK")
</pallas_src>

<mosaic_0001>
module attributes {stable_mosaic.version = 11 : i64} {
  func.func @affine_coupling_kernel(%arg0: i32, %arg1: memref<128x4xf32, #tpu.memory_space<vmem>>, %arg2: memref<2x16xf32, #tpu.memory_space<vmem>>, %arg3: memref<3x16x16xf32, #tpu.memory_space<vmem>>, %arg4: memref<16x4xf32, #tpu.memory_space<vmem>>, %arg5: memref<4x16xf32, #tpu.memory_space<vmem>>, %arg6: memref<1x4xf32, #tpu.memory_space<vmem>>, %arg7: memref<128x4xf32, #tpu.memory_space<vmem>>, %arg8: memref<128x1xf32, #tpu.memory_space<vmem>>) attributes {dimension_semantics = [#tpu.dimension_semantics<parallel>], iteration_bounds = array<i64: 2>, scalar_prefetch = 0 : i64, scratch_operands = 0 : i64, tpu.core_type = #tpu.core_type<tc>, window_params = [{transform_indices = @transform_0, window_bounds = array<i64: 128, 4>}, {pipeline_mode = #tpu.pipeline_mode<synchronous>, transform_indices = @transform_1, window_bounds = array<i64: 2, 16>}, {pipeline_mode = #tpu.pipeline_mode<synchronous>, transform_indices = @transform_2, window_bounds = array<i64: 3, 16, 16>}, {pipeline_mode = #tpu.pipeline_mode<synchronous>, transform_indices = @transform_3, window_bounds = array<i64: 16, 4>}, {pipeline_mode = #tpu.pipeline_mode<synchronous>, transform_indices = @transform_4, window_bounds = array<i64: 4, 16>}, {pipeline_mode = #tpu.pipeline_mode<synchronous>, transform_indices = @transform_5, window_bounds = array<i64: 1, 4>}, {transform_indices = @transform_6, window_bounds = array<i64: 128, 4>}, {transform_indices = @transform_7, window_bounds = array<i64: 128, 1>}]} {
    %c0 = arith.constant 0 : index
    %c0_0 = arith.constant 0 : index
    %0 = vector.load %arg1[%c0, %c0_0] : memref<128x4xf32, #tpu.memory_space<vmem>>, vector<128x4xf32>
    %1 = vector.extract_strided_slice %0 {offsets = [0, 0], sizes = [128, 2], strides = [1, 1]} : vector<128x4xf32> to vector<128x2xf32>
    %2 = vector.extract_strided_slice %0 {offsets = [0, 2], sizes = [128, 2], strides = [1, 1]} : vector<128x4xf32> to vector<128x2xf32>
    %c0_1 = arith.constant 0 : index
    %c0_2 = arith.constant 0 : index
    %3 = vector.load %arg5[%c0_1, %c0_2] : memref<4x16xf32, #tpu.memory_space<vmem>>, vector<4x16xf32>
    %c0_3 = arith.constant 0 : index
    %c0_4 = arith.constant 0 : index
    %4 = vector.load %arg2[%c0_3, %c0_4] : memref<2x16xf32, #tpu.memory_space<vmem>>, vector<2x16xf32>
    %cst = arith.constant dense<0.000000e+00> : vector<128x16xf32>
    %5 = tpu.matmul %1, %4, %cst {dimension_numbers = #tpu.dot_dimension_numbers<[1], [0], [0], [1], [0, 0, 1, 1], [], []>} : vector<128x2xf32>, vector<2x16xf32>, vector<128x16xf32> -> vector<128x16xf32>
    %6 = vector.extract_strided_slice %3 {offsets = [0, 0], sizes = [1, 16], strides = [1, 1]} : vector<4x16xf32> to vector<1x16xf32>
    %7 = vector.broadcast %6 : vector<1x16xf32> to vector<128x16xf32>
    %8 = arith.addf %5, %7 : vector<128x16xf32>
    %cst_5 = arith.constant 0.000000e+00 : f32
    %9 = vector.broadcast %cst_5 : f32 to vector<128x16xf32>
    %10 = arith.cmpf ogt, %8, %9 : vector<128x16xf32>
    %cst_6 = arith.constant 0.00999999977 : f32
    %11 = vector.broadcast %cst_6 : f32 to vector<128x16xf32>
    %12 = arith.mulf %11, %8 : vector<128x16xf32>
    %13 = arith.select %10, %8, %12 : vector<128x16xi1>, vector<128x16xf32>
    %c0_7 = arith.constant 0 : index
    %c0_8 = arith.constant 0 : index
    %c0_9 = arith.constant 0 : index
    %14 = vector.load %arg3[%c0_7, %c0_8, %c0_9] : memref<3x16x16xf32, #tpu.memory_space<vmem>>, vector<1x16x16xf32>
    %15 = vector.shape_cast %14 : vector<1x16x16xf32> to vector<16x16xf32>
    %cst_10 = arith.constant dense<0.000000e+00> : vector<128x16xf32>
    %16 = tpu.matmul %13, %15, %cst_10 {dimension_numbers = #tpu.dot_dimension_numbers<[1], [0], [0], [1], [0, 0, 1, 1], [], []>} : vector<128x16xf32>, vector<16x16xf32>, vector<128x16xf32> -> vector<128x16xf32>
    %17 = vector.extract_strided_slice %3 {offsets = [1, 0], sizes = [1, 16], strides = [1, 1]} : vector<4x16xf32> to vector<1x16xf32>
    %18 = vector.broadcast %17 : vector<1x16xf32> to vector<128x16xf32>
    %19 = arith.addf %16, %18 : vector<128x16xf32>
    %cst_11 = arith.constant 0.000000e+00 : f32
    %20 = vector.broadcast %cst_11 : f32 to vector<128x16xf32>
    %21 = arith.cmpf ogt, %19, %20 : vector<128x16xf32>
    %cst_12 = arith.constant 0.00999999977 : f32
    %22 = vector.broadcast %cst_12 : f32 to vector<128x16xf32>
    %23 = arith.mulf %22, %19 : vector<128x16xf32>
    %24 = arith.select %21, %19, %23 : vector<128x16xi1>, vector<128x16xf32>
    %c1 = arith.constant 1 : index
    %c0_13 = arith.constant 0 : index
    %c0_14 = arith.constant 0 : index
    %25 = vector.load %arg3[%c1, %c0_13, %c0_14] : memref<3x16x16xf32, #tpu.memory_space<vmem>>, vector<1x16x16xf32>
    %26 = vector.shape_cast %25 : vector<1x16x16xf32> to vector<16x16xf32>
    %cst_15 = arith.constant dense<0.000000e+00> : vector<128x16xf32>
    %27 = tpu.matmul %24, %26, %cst_15 {dimension_numbers = #tpu.dot_dimension_numbers<[1], [0], [0], [1], [0, 0, 1, 1], [], []>} : vector<128x16xf32>, vector<16x16xf32>, vector<128x16xf32> -> vector<128x16xf32>
    %28 = vector.extract_strided_slice %3 {offsets = [2, 0], sizes = [1, 16], strides = [1, 1]} : vector<4x16xf32> to vector<1x16xf32>
    %29 = vector.broadcast %28 : vector<1x16xf32> to vector<128x16xf32>
    %30 = arith.addf %27, %29 : vector<128x16xf32>
    %cst_16 = arith.constant 0.000000e+00 : f32
    %31 = vector.broadcast %cst_16 : f32 to vector<128x16xf32>
    %32 = arith.cmpf ogt, %30, %31 : vector<128x16xf32>
    %cst_17 = arith.constant 0.00999999977 : f32
    %33 = vector.broadcast %cst_17 : f32 to vector<128x16xf32>
    %34 = arith.mulf %33, %30 : vector<128x16xf32>
    %35 = arith.select %32, %30, %34 : vector<128x16xi1>, vector<128x16xf32>
    %c2 = arith.constant 2 : index
    %c0_18 = arith.constant 0 : index
    %c0_19 = arith.constant 0 : index
    %36 = vector.load %arg3[%c2, %c0_18, %c0_19] : memref<3x16x16xf32, #tpu.memory_space<vmem>>, vector<1x16x16xf32>
    %37 = vector.shape_cast %36 : vector<1x16x16xf32> to vector<16x16xf32>
    %cst_20 = arith.constant dense<0.000000e+00> : vector<128x16xf32>
    %38 = tpu.matmul %35, %37, %cst_20 {dimension_numbers = #tpu.dot_dimension_numbers<[1], [0], [0], [1], [0, 0, 1, 1], [], []>} : vector<128x16xf32>, vector<16x16xf32>, vector<128x16xf32> -> vector<128x16xf32>
    %39 = vector.extract_strided_slice %3 {offsets = [3, 0], sizes = [1, 16], strides = [1, 1]} : vector<4x16xf32> to vector<1x16xf32>
    %40 = vector.broadcast %39 : vector<1x16xf32> to vector<128x16xf32>
    %41 = arith.addf %38, %40 : vector<128x16xf32>
    %cst_21 = arith.constant 0.000000e+00 : f32
    %42 = vector.broadcast %cst_21 : f32 to vector<128x16xf32>
    %43 = arith.cmpf ogt, %41, %42 : vector<128x16xf32>
    %cst_22 = arith.constant 0.00999999977 : f32
    %44 = vector.broadcast %cst_22 : f32 to vector<128x16xf32>
    %45 = arith.mulf %44, %41 : vector<128x16xf32>
    %46 = arith.select %43, %41, %45 : vector<128x16xi1>, vector<128x16xf32>
    %c0_23 = arith.constant 0 : index
    %c0_24 = arith.constant 0 : index
    %47 = vector.load %arg4[%c0_23, %c0_24] : memref<16x4xf32, #tpu.memory_space<vmem>>, vector<16x4xf32>
    %cst_25 = arith.constant dense<0.000000e+00> : vector<128x4xf32>
    %48 = tpu.matmul %46, %47, %cst_25 {dimension_numbers = #tpu.dot_dimension_numbers<[1], [0], [0], [1], [0, 0, 1, 1], [], []>} : vector<128x16xf32>, vector<16x4xf32>, vector<128x4xf32> -> vector<128x4xf32>
    %c0_26 = arith.constant 0 : index
    %c0_27 = arith.constant 0 : index
    %49 = vector.load %arg6[%c0_26, %c0_27] : memref<1x4xf32, #tpu.memory_space<vmem>>, vector<1x4xf32>
    %50 = vector.broadcast %49 : vector<1x4xf32> to vector<128x4xf32>
    %51 = arith.addf %48, %50 : vector<128x4xf32>
    %52 = vector.extract_strided_slice %51 {offsets = [0, 0], sizes = [128, 2], strides = [1, 1]} : vector<128x4xf32> to vector<128x2xf32>
    %53 = vector.extract_strided_slice %51 {offsets = [0, 2], sizes = [128, 2], strides = [1, 1]} : vector<128x4xf32> to vector<128x2xf32>
    %54 = math.exp %52 : vector<128x2xf32>
    %55 = arith.mulf %54, %2 : vector<128x2xf32>
    %56 = arith.addf %55, %53 : vector<128x2xf32>
    %57 = tpu.concatenate %1, %56 in 1 : vector<128x2xf32>, vector<128x2xf32> -> vector<128x4xf32>
    %c0_28 = arith.constant 0 : index
    %c0_29 = arith.constant 0 : index
    %58 = vector.load %arg7[%c0_28, %c0_29] : memref<128x4xf32, #tpu.memory_space<vmem>>, vector<128x4xf32>
    tpu.vector_store %arg7[%c0_28, %c0_29], %57 {strides = array<i32>} : memref<128x4xf32, #tpu.memory_space<vmem>>, vector<128x4xf32>,
    %cst_30 = arith.constant dense<0.000000e+00> : vector<128xf32>
    %59 = vector.multi_reduction <add>, %52, %cst_30 [1] : vector<128x2xf32> to vector<128xf32>
    %60 = vector.shape_cast %59 : vector<128xf32> to vector<128x1xf32>
    %c0_31 = arith.constant 0 : index
    %c0_32 = arith.constant 0 : index
    %61 = vector.load %arg8[%c0_31, %c0_32] : memref<128x1xf32, #tpu.memory_space<vmem>>, vector<128x1xf32>
    tpu.vector_store %arg8[%c0_31, %c0_32], %60 {strides = array<i32>} : memref<128x1xf32, #tpu.memory_space<vmem>>, vector<128x1xf32>,
    return
  }
  func.func @transform_0(%arg0: i32) -> (i32, i32) {
    %c0_i32 = arith.constant 0 : i32
    %c0_i32_0 = arith.constant 0 : i32
    return %arg0, %c0_i32 : i32, i32
  }
  func.func @transform_1(%arg0: i32) -> (i32, i32) {
    %c0_i32 = arith.constant 0 : i32
    %c0_i32_0 = arith.constant 0 : i32
    %c0_i32_1 = arith.constant 0 : i32
    return %c0_i32, %c0_i32_0 : i32, i32
  }
  func.func @transform_2(%arg0: i32) -> (i32, i32, i32) {
    %c0_i32 = arith.constant 0 : i32
    %c0_i32_0 = arith.constant 0 : i32
    %c0_i32_1 = arith.constant 0 : i32
    %c0_i32_2 = arith.constant 0 : i32
    return %c0_i32, %c0_i32_0, %c0_i32_1 : i32, i32, i32
  }
  func.func @transform_3(%arg0: i32) -> (i32, i32) {
    %c0_i32 = arith.constant 0 : i32
    %c0_i32_0 = arith.constant 0 : i32
    %c0_i32_1 = arith.constant 0 : i32
    return %c0_i32, %c0_i32_0 : i32, i32
  }
  func.func @transform_4(%arg0: i32) -> (i32, i32) {
    %c0_i32 = arith.constant 0 : i32
    %c0_i32_0 = arith.constant 0 : i32
    %c0_i32_1 = arith.constant 0 : i32
    return %c0_i32, %c0_i32_0 : i32, i32
  }
  func.func @transform_5(%arg0: i32) -> (i32, i32) {
    %c0_i32 = arith.constant 0 : i32
    %c0_i32_0 = arith.constant 0 : i32
    %c0_i32_1 = arith.constant 0 : i32
    return %c0_i32, %c0_i32_0 : i32, i32
  }
  func.func @transform_6(%arg0: i32) -> (i32, i32) {
    %c0_i32 = arith.constant 0 : i32
    %c0_i32_0 = arith.constant 0 : i32
    return %arg0, %c0_i32 : i32, i32
  }
  func.func @transform_7(%arg0: i32) -> (i32, i32) {
    %c0_i32 = arith.constant 0 : i32
    %c0_i32_0 = arith.constant 0 : i32
    return %arg0, %c0_i32 : i32, i32
  }
}

</mosaic_0001>

<bundles_post_ra>
// kernel: tpu_custom_call.1
= control target key start
LH: loop header
LB: loop body
LE: loop exit
PB: predicated region body
PF: predicated region fallthrough
CT: control target
= control target key end

     0   :  { %s2390_s24 = smov 0   ;;  %s2972_s0 = inlined_call_operand.vmem [shape: f32[256,4], index: 0, kind: input, shape index: {}]   ;;  %s2973_s1 = inlined_call_operand.vmem [shape: f32[2,16], index: 1, kind: input, shape index: {}]   ;;  %s2974_s2 = inlined_call_operand.vmem [shape: f32[3,16,16], index: 2, kind: input, shape index: {}]   ;;  %s2975_s3 = inlined_call_operand.vmem [shape: f32[16,4], index: 3, kind: input, shape index: {}]   ;;  %s2976_s4 = inlined_call_operand.vmem [shape: f32[4,16], index: 4, kind: input, shape index: {}]   ;;  %s2977_s5 = inlined_call_operand.vmem [shape: f32[1,4], index: 5, kind: input, shape index: {}]   ;;  %s2978_s6 = inlined_call_operand.vmem [shape: f32[256,4], index: 6, kind: output, shape index: {0}]   ;;  %s2979_s7 = inlined_call_operand.vmem [shape: f32[256,1], index: 7, kind: output, shape index: {1}]  }
   0x1 LB: > { %s1938_s25 = sadd.s32 4294967295, %s2346_s24   ;;  %p1942_p0 = scmp.ge.s32.totalorder %s2346_s24, 1  ;;  %s2346_s24 = sphi %s2390_s24, %s18_s24  }
   0x2   : > { %p241_p1 = scmp.lt.s32.totalorder %s2346_s24, 3 }
   0x4   : > { %p242_p2 = pnand %p1942_p0, %p241_p1 }
   0x5   : > { %v313_v0 = vld [vmem:[%s2973_s1] sm:$0x3] (!%p242_p2)  ;;  %vm367_vm0 = vcmask (!%p242_p2), 1041408   ;;  %s1943_s28 = sshll.u32 (!%p242_p2), %s1938_s25, 4  ;;  %v565_v2 = vld [vmem:[%s2974_s2 + $0x8] sm:$0xff] (!%p242_p2)  ;;  %vm318_vm1 = vcmask (!%p242_p2), 15360   ;;  %v314_v23 = vlaneseq (!%p242_p2) }
   0x6   : > { %245 = sbr.rel (%p242_p2) target bundleno = 1727 (0x6bf), region = 44  ;;  %v564_v1 = vld [vmem:[%s2974_s2] sm:$0xff] (!%p242_p2)  ;;  %2126 = vmatprep.subr.msk.mxu0 (!%p242_p2), %vm367_vm0, %v313_v0  ;;  %p279_p3 = scmp.lt.s32.totalorder (!%p242_p2), %s1943_s28, 31  ;;  %2280 = vmatprep.subr.msk.mxu1 (!%p242_p2), %vm367_vm0, %v313_v0  ;;  %v1982_v20 = vld [vmem:[%s2974_s2 + $0x10] sm:$0xff] (!%p242_p2)  ;;  %v1983_v21 = vld [vmem:[%s2974_s2 + $0x18] sm:$0xff] (!%p242_p2)  ;;  %vm570_vm4 = vcmask (!%p242_p2), 130048  }
   0x7   : > { %2127 = vmatpush3.msk.msra.mxu0 (!%p242_p2), %vm367_vm0, %v313_v0  ;;  %2281 = vmatpush3.msk.msra.mxu1 (!%p242_p2), %vm367_vm0, %v313_v0  ;;  %v2264_v3 = vpack.c.bf16 (!%p242_p2), %v565_v2, %v564_v1  ;;  %v2268_v22 = vpack.c.bf16 (!%p242_p2), %v1983_v21, %v1982_v20  ;;  %v2501_v24 = vshrl.u32 (!%p242_p2), %v314_v23, 7  ;;  %v2507_v26 = vld [vmem:[%s2976_s4] sm:$0xf] (!%p242_p2)  ;;  %s2348_s29 = smov (!%p242_p2), 126   ;;  %s2349_s14 = smov (!%p242_p2), 2  }
   0x9   : > { %2265 = vmatprep.subr.bf16.mxu1 (!%p242_p2), %v2264_v3  ;;  %2269 = vmatprep.subr.bf16.mxu0 (!%p242_p2), %v2268_v22  ;;  %v316_v25 = vsub.s32 (!%p242_p2), 0, %v2501_v24 }
   0xb   : > { %v2510_v27 = vrot.slane (!%p242_p2), %v2507_v26, %v316_v25 }
   0xd   : > { %s2981_s28 = smov (!%p279_p3, %s1943_s28), 31 }
   0xe   : > { %s2407_s10 = sshll.u32 %s2981_s28, 3 }
   0xf   : > { %s2413_s13 = scalar_lea.vmem %s2972_s0, %s2407_s10  ;;  %s2777_s12 = scalar_lea.vmem %s2979_s7, %s2407_s10 }
  0x10   : > { %v2416_v4 = vld [vmem:[%s2413_s13] sm:$0xff]  ;;  %v2419_v5 = vld [vmem:[%s2413_s13 + $0x8] sm:$0xff]  ;;  %v2422_v6 = vld [vmem:[%s2413_s13 + $0x10] sm:$0xff]  ;;  %s2901_s17 = scalar_lea.vmem %s2978_s6, %s2407_s10 }
  0x11   : > { %2128 = vmatprep.mubr.msk.f32.mxu0 %vm318_vm1, %v2416_v4  ;;  %v2429_v7 = vld [vmem:[%s2413_s13 + $0x40] sm:$0xff]  ;;  %v2434_v8 = vld [vmem:[%s2413_s13 + $0x18] sm:$0xff]  ;;  %v2439_v9 = vld [vmem:[%s2413_s13 + $0x48] sm:$0xff]  ;;  %1542 = vrot.lane.b32.xlu0 %v2416_v4, %s2348_s29  ;;  %v1065_v4 = vsub.s32 3, %v2501_v24 }
  0x12   : > { %2129 = vmatmul.mubr.msk.f32.vlgmr.msra.gmra.mrb[0].mxu0 %vm318_vm1, %v2419_v5  ;;  %2140 = vmatprep.mubr.msk.f32.mxu1 %vm318_vm1, %v2429_v7  ;;  %v2442_v10 = vld [vmem:[%s2413_s13 + $0x50] sm:$0xff]  ;;  %v2445_v11 = vld [vmem:[%s2413_s13 + $0x20] sm:$0xff]  ;;  %v2452_v12 = vld [vmem:[%s2413_s13 + $0x58] sm:$0xff] }
  0x13   : > { %2131 = vmatprep.mubr.msk.f32.mxu0 %vm318_vm1, %v2422_v6  ;;  %2141 = vmatmul.mubr.msk.f32.vlgmr.msra.gmra.mrb[0].mxu1 %vm318_vm1, %v2439_v9  ;;  %v2457_v13 = vld [vmem:[%s2413_s13 + $0x60] sm:$0xff]  ;;  %v2462_v14 = vld [vmem:[%s2413_s13 + $0x28] sm:$0xff]  ;;  %v2465_v15 = vld [vmem:[%s2413_s13 + $0x30] sm:$0xff] }
  0x14   : > { %2143 = vmatprep.mubr.msk.f32.mxu1 %vm318_vm1, %v2442_v10  ;;  %2267 = vmatpush3.bf16.msra.mxu1 %v2264_v3  ;;  %v2472_v16 = vld [vmem:[%s2413_s13 + $0x68] sm:$0xff]  ;;  %v2477_v17 = vld [vmem:[%s2413_s13 + $0x70] sm:$0xff]  ;;  %v2482_v18 = vld [vmem:[%s2413_s13 + $0x38] sm:$0xff] }
  0x15   : > { %v2489_v19 = vld [vmem:[%s2413_s13 + $0x78] sm:$0xff]  ;;  %2271 = vmatpush3.bf16.msra.mxu0 %v2268_v22  ;;  %1546 = vrot.lane.b32.xlu1 %v2422_v6, %s2348_s29 }
  0x16   : > { %2132 = vmatmul.mubr.msk.f32.gmra.mrb[2].mxu0 %vm318_vm1, %v2434_v8  ;;  %1544 = vrot.lane.b32.xlu0 %v2419_v5, %s2348_s29  ;;  %v2662_v5 = vrot.slane %v2507_v26, %v1065_v4 }
  0x17   : > { %2134 = vmatprep.mubr.msk.f32.mxu0 %vm318_vm1, %v2445_v11  ;;  %2144 = vmatmul.mubr.msk.f32.gmra.mrb[2].mxu1 %vm318_vm1, %v2452_v12 }
  0x18   : > { %2146 = vmatprep.mubr.msk.f32.mxu1 %vm318_vm1, %v2457_v13 }
  0x19   : > { %1548 = vrot.lane.b32.xlu1 %v2434_v8, %s2348_s29 }
  0x1a   : > { %2135 = vmatmul.mubr.msk.f32.gmra.mrb[4].mxu0 %vm318_vm1, %v2462_v14  ;;  %1550 = vrot.lane.b32.xlu0 %v2445_v11, %s2348_s29 }
  0x1b   : > { %2137 = vmatprep.mubr.msk.f32.mxu0 %vm318_vm1, %v2465_v15  ;;  %2147 = vmatmul.mubr.msk.f32.gmra.mrb[4].mxu1 %vm318_vm1, %v2472_v16 }
  0x1c   : > { %2149 = vmatprep.mubr.msk.f32.mxu1 %vm318_vm1, %v2477_v17 }
  0x1d   : > { %1552 = vrot.lane.b32.xlu1 %v2462_v14, %s2348_s29 }
  0x1e   : > { %2138 = vmatmul.mubr.msk.f32.gmra.mrb[6].mxu0 %vm318_vm1, %v2482_v18  ;;  %1554 = vrot.lane.b32.xlu0 %v2465_v15, %s2348_s29 }
  0x1f   : > { %2150 = vmatmul.mubr.msk.f32.gmra.mrb[6].mxu1 %vm318_vm1, %v2489_v19 }
  0x21   : > { %1556 = vrot.lane.b32.xlu1 %v2482_v18, %s2348_s29 }
  0x22   : > { %1558 = vrot.lane.b32.xlu0 %v2429_v7, %s2348_s29 }
  0x25   : > { %1560 = vrot.lane.b32.xlu1 %v2439_v9, %s2348_s29 }
  0x26   : > { %1562 = vrot.lane.b32.xlu0 %v2442_v10, %s2348_s29 }
  0x29   : > { %1564 = vrot.lane.b32.xlu1 %v2452_v12, %s2348_s29 }
  0x2a   : > { %1566 = vrot.lane.b32.xlu0 %v2457_v13, %s2348_s29 }
  0x2d   : > { %1568 = vrot.lane.b32.xlu1 %v2472_v16, %s2348_s29 }
  0x2e   : > { %1570 = vrot.lane.b32.xlu0 %v2477_v17, %s2348_s29 }
  0x31   : > { %1572 = vrot.lane.b32.xlu1 %v2489_v19, %s2348_s29 }
  0xe5   : > { %v2130_v28 = vpop.f32.mrb[0].mxu0 }
  0xe6   : > { %v443_v29 = vadd.f32 %v2130_v28, %v2510_v27  ;;  %v437_v30 = vpop.f32.mrb[1].mxu0  ;;  %v2142_v32 = vpop.f32.mrb[0].mxu1 }
  0xe7   : > { %v438_v31 = vadd.f32 %v437_v30, %v2510_v27  ;;  %v477_v34 = vpop.f32.mrb[1].mxu1  ;;  %v483_v60 = vadd.f32 %v2142_v32, %v2510_v27 }
  0xe8   : > { %v533_v33 = vmul.f32 0.01, %v443_v29  ;;  %vm517_vm2 = vcmp.gt.f32.partialorder %v443_v29, 0.0  ;;  %v478_v52 = vadd.f32 %v477_v34, %v2510_v27 }
  0xe9   : > { %vm516_vm3 = vcmp.gt.f32.partialorder %v438_v31, 0.0  ;;  %v532_v35 = vmul.f32 0.01, %v438_v31  ;;  %v2133_v36 = vpop.f32.mrb[2].mxu0  ;;  %vm525_vm12 = vcmp.gt.f32.partialorder %v483_v60, 0.0 }
  0xea   : > { %v453_v37 = vadd.f32 %v2133_v36, %v2510_v27  ;;  %v447_v38 = vpop.f32.mrb[3].mxu0  ;;  %v2145_v41 = vpop.f32.mrb[2].mxu1  ;;  %v549_v42 = vsel %vm517_vm2, %v443_v29, %v533_v33  ;;  %v540_v0 = vmul.f32 0.01, %v478_v52  ;;  %vm524_vm10 = vcmp.gt.f32.partialorder %v478_v52, 0.0 }
  0xeb   : > { %v548_v39 = vsel %vm516_vm3, %v438_v31, %v532_v35  ;;  %v448_v40 = vadd.f32 %v447_v38, %v2510_v27  ;;  %v487_v44 = vpop.f32.mrb[3].mxu1  ;;  %v541_v22 = vmul.f32 0.01, %v483_v60  ;;  %v493_v23 = vadd.f32 %v2145_v41, %v2510_v27 }
  0xec   : > { %2156 = vmatprep.mubr.msk.f32.mxu1 %vm570_vm4, %v548_v39  ;;  %vm519_vm5 = vcmp.gt.f32.partialorder %v453_v37, 0.0  ;;  %v535_v43 = vmul.f32 0.01, %v453_v37  ;;  %v488_v1 = vadd.f32 %v487_v44, %v2510_v27  ;;  %v556_v30 = vsel %vm524_vm10, %v478_v52, %v540_v0 }
  0xed   : > { %2157 = vmatmul.mubr.msk.f32.vlgmr.msra.gmra.mrb[8].mxu1 %vm570_vm4, %v549_v42  ;;  %vm518_vm6 = vcmp.gt.f32.partialorder %v448_v40, 0.0  ;;  %v534_v45 = vmul.f32 0.01, %v448_v40  ;;  %v2136_v46 = vpop.f32.mrb[4].mxu0  ;;  %v543_v32 = vmul.f32 0.01, %v493_v23  ;;  %v557_v34 = vsel %vm525_vm12, %v483_v60, %v541_v22 }
  0xee   : > { %v551_v47 = vsel %vm519_vm5, %v453_v37, %v535_v43  ;;  %v463_v48 = vadd.f32 %v2136_v46, %v2510_v27  ;;  %v457_v49 = vpop.f32.mrb[5].mxu0  ;;  %v2148_v53 = vpop.f32.mrb[4].mxu1  ;;  %v542_v29 = vmul.f32 0.01, %v488_v1  ;;  %vm526_vm13 = vcmp.gt.f32.partialorder %v488_v1, 0.0 }
  0xef   : > { %v550_v50 = vsel %vm518_vm6, %v448_v40, %v534_v45  ;;  %v458_v51 = vadd.f32 %v457_v49, %v2510_v27  ;;  %v497_v55 = vpop.f32.mrb[5].mxu1  ;;  %v503_v33 = vadd.f32 %v2148_v53, %v2510_v27  ;;  %vm527_vm14 = vcmp.gt.f32.partialorder %v493_v23, 0.0 }
  0xf0   : > { %2159 = vmatprep.mubr.msk.f32.mxu1 %vm570_vm4, %v550_v50  ;;  %vm521_vm7 = vcmp.gt.f32.partialorder %v463_v48, 0.0  ;;  %v537_v54 = vmul.f32 0.01, %v463_v48  ;;  %v498_v31 = vadd.f32 %v497_v55, %v2510_v27  ;;  %v558_v36 = vsel %vm526_vm13, %v488_v1, %v542_v29 }
  0xf1   : > { %2160 = vmatmul.mubr.msk.f32.gmra.mrb[10].mxu1 %vm570_vm4, %v551_v47  ;;  %vm520_vm8 = vcmp.gt.f32.partialorder %v458_v51, 0.0  ;;  %v536_v56 = vmul.f32 0.01, %v458_v51  ;;  %v2139_v57 = vpop.f32.mrb[6].mxu0  ;;  %v545_v38 = vmul.f32 0.01, %v503_v33  ;;  %v559_v40 = vsel %vm527_vm14, %v493_v23, %v543_v32 }
  0xf2   : > { %v473_v58 = vadd.f32 %v2139_v57, %v2510_v27  ;;  %v467_v59 = vpop.f32.mrb[7].mxu0  ;;  %v553_v61 = vsel %vm521_vm7, %v463_v48, %v537_v54  ;;  %v2151_v2 = vpop.f32.mrb[6].mxu1  ;;  %v544_v35 = vmul.f32 0.01, %v498_v31  ;;  %vm528_vm15 = vcmp.gt.f32.partialorder %v498_v31, 0.0  ;;  %v2001_v47 = vld [vmem:[%s2974_s2 + $0x28] sm:$0xff] }
  0xf3   : > { %v468_v62 = vadd.f32 %v467_v59, %v2510_v27  ;;  %v552_v63 = vsel %vm520_vm8, %v458_v51, %v536_v56  ;;  %v507_v20 = vpop.f32.mrb[7].mxu1  ;;  %v513_v39 = vadd.f32 %v2151_v2, %v2510_v27  ;;  %vm529_vm0 = vcmp.gt.f32.partialorder %v503_v33, 0.0 }
  0xf4   : > { %vm523_vm9 = vcmp.gt.f32.partialorder %v473_v58, 0.0  ;;  %v539_v3 = vmul.f32 0.01, %v473_v58  ;;  %2162 = vmatprep.mubr.msk.f32.mxu1 %vm570_vm4, %v552_v63  ;;  %v508_v37 = vadd.f32 %v507_v20, %v2510_v27  ;;  %v560_v42 = vsel %vm528_vm15, %v498_v31, %v544_v35  ;;  %v2000_v27 = vld [vmem:[%s2974_s2 + $0x20] sm:$0xff] }
  0xf5   : > { %vm522_vm11 = vcmp.gt.f32.partialorder %v468_v62, 0.0  ;;  %v538_v21 = vmul.f32 0.01, %v468_v62  ;;  %2163 = vmatmul.mubr.msk.f32.gmra.mrb[12].mxu1 %vm570_vm4, %v553_v61  ;;  %v547_v43 = vmul.f32 0.01, %v513_v39  ;;  %v561_v44 = vsel %vm529_vm0, %v503_v33, %v545_v38 }
  0xf6   : > { %v555_v25 = vsel %vm523_vm9, %v473_v58, %v539_v3  ;;  %v546_v41 = vmul.f32 0.01, %v508_v37  ;;  %vm530_vm2 = vcmp.gt.f32.partialorder %v508_v37, 0.0  ;;  %vm531_vm3 = vcmp.gt.f32.partialorder %v513_v39, 0.0 }
  0xf7   : > { %v554_v28 = vsel %vm522_vm11, %v468_v62, %v538_v21  ;;  %v563_v46 = vsel %vm531_vm3, %v513_v39, %v547_v43  ;;  %v2272_v48 = vpack.c.bf16 %v2001_v47, %v2000_v27  ;;  %v568_v49 = vsub.s32 1, %v2501_v24 }
  0xf8   : > { %2165 = vmatprep.mubr.msk.f32.mxu1 %vm570_vm4, %v554_v28  ;;  %v562_v45 = vsel %vm530_vm2, %v508_v37, %v546_v41 }
  0xf9   : > { %2166 = vmatmul.mubr.msk.f32.gmra.mrb[14].mxu1 %vm570_vm4, %v555_v25  ;;  %2273 = vmatprep.subr.bf16.mxu1 %v2272_v48  ;;  %v2552_v50 = vrot.slane %v2507_v26, %v568_v49 }
  0xfa   : > { %2168 = vmatprep.mubr.msk.f32.mxu1 %vm570_vm4, %v556_v30  ;;  %2275 = vmatpush3.bf16.msra.mxu1 %v2272_v48 }
  0xfd   : > { %2169 = vmatmul.mubr.msk.f32.gmra.mrb[16].mxu1 %vm570_vm4, %v557_v34 }
  0xfe   : > { %2171 = vmatprep.mubr.msk.f32.mxu1 %vm570_vm4, %v558_v36 }
 0x101   : > { %2172 = vmatmul.mubr.msk.f32.gmra.mrb[18].mxu1 %vm570_vm4, %v559_v40 }
 0x102   : > { %2174 = vmatprep.mubr.msk.f32.mxu1 %vm570_vm4, %v560_v42 }
 0x105   : > { %2175 = vmatmul.mubr.msk.f32.gmra.mrb[20].mxu1 %vm570_vm4, %v561_v44 }
 0x106   : > { %2177 = vmatprep.mubr.msk.f32.mxu1 %vm570_vm4, %v562_v45 }
 0x109   : > { %2178 = vmatmul.mubr.msk.f32.gmra.mrb[22].mxu1 %vm570_vm4, %v563_v46 }
 0x1c0   : > { %v2158_v51 = vpop.f32.mrb[8].mxu1 }
 0x1c1   : > { %v691_v52 = vadd.f32 %v2158_v51, %v2552_v50  ;;  %v685_v53 = vpop.f32.mrb[9].mxu1 }
 0x1c2   : > { %v686_v54 = vadd.f32 %v685_v53, %v2552_v50 }
 0x1c3   : > { %v781_v55 = vmul.f32 0.01, %v691_v52  ;;  %vm765_vm5 = vcmp.gt.f32.partialorder %v691_v52, 0.0 }
 0x1c4   : > { %vm764_vm6 = vcmp.gt.f32.partialorder %v686_v54, 0.0  ;;  %v780_v56 = vmul.f32 0.01, %v686_v54  ;;  %v2161_v57 = vpop.f32.mrb[10].mxu1 }
 0x1c5   : > { %v701_v58 = vadd.f32 %v2161_v57, %v2552_v50  ;;  %v695_v59 = vpop.f32.mrb[11].mxu1  ;;  %v797_v62 = vsel %vm765_vm5, %v691_v52, %v781_v55 }
 0x1c6   : > { %v796_v60 = vsel %vm764_vm6, %v686_v54, %v780_v56  ;;  %v696_v61 = vadd.f32 %v695_v59, %v2552_v50 }
 0x1c7   : > { %2184 = vmatprep.mubr.msk.f32.mxu0 %vm570_vm4, %v796_v60  ;;  %vm767_vm7 = vcmp.gt.f32.partialorder %v701_v58, 0.0  ;;  %v783_v63 = vmul.f32 0.01, %v701_v58 }
 0x1c8   : > { %2185 = vmatmul.mubr.msk.f32.vlgmr.msra.gmra.mrb[8].mxu0 %vm570_vm4, %v797_v62  ;;  %vm766_vm8 = vcmp.gt.f32.partialorder %v696_v61, 0.0  ;;  %v782_v0 = vmul.f32 0.01, %v696_v61  ;;  %v2164_v1 = vpop.f32.mrb[12].mxu1 }
 0x1c9   : > { %v799_v2 = vsel %vm767_vm7, %v701_v58, %v783_v63  ;;  %v711_v3 = vadd.f32 %v2164_v1, %v2552_v50  ;;  %v705_v20 = vpop.f32.mrb[13].mxu1 }
 0x1ca   : > { %v798_v21 = vsel %vm766_vm8, %v696_v61, %v782_v0  ;;  %v706_v22 = vadd.f32 %v705_v20, %v2552_v50 }
 0x1cb   : > { %2187 = vmatprep.mubr.msk.f32.mxu0 %vm570_vm4, %v798_v21  ;;  %vm769_vm9 = vcmp.gt.f32.partialorder %v711_v3, 0.0  ;;  %v785_v23 = vmul.f32 0.01, %v711_v3 }
 0x1cc   : > { %2188 = vmatmul.mubr.msk.f32.gmra.mrb[10].mxu0 %vm570_vm4, %v799_v2  ;;  %vm768_vm10 = vcmp.gt.f32.partialorder %v706_v22, 0.0  ;;  %v784_v25 = vmul.f32 0.01, %v706_v22  ;;  %v2167_v28 = vpop.f32.mrb[14].mxu1 }
 0x1cd   : > { %v721_v29 = vadd.f32 %v2167_v28, %v2552_v50  ;;  %v715_v30 = vpop.f32.mrb[15].mxu1  ;;  %v801_v31 = vsel %vm769_vm9, %v711_v3, %v785_v23 }
 0x1ce   : > { %v716_v32 = vadd.f32 %v715_v30, %v2552_v50  ;;  %v800_v33 = vsel %vm768_vm10, %v706_v22, %v784_v25  ;;  %v1308_v22 = vld [vmem:[%s2975_s3] sm:$0xff]  ;;  %v817_v25 = vsub.s32 2, %v2501_v24 }
 0x1cf   : > { %vm771_vm11 = vcmp.gt.f32.partialorder %v721_v29, 0.0  ;;  %v787_v34 = vmul.f32 0.01, %v721_v29  ;;  %2190 = vmatprep.mubr.msk.f32.mxu0 %vm570_vm4, %v800_v33 }
 0x1d0   : > { %vm770_vm12 = vcmp.gt.f32.partialorder %v716_v32, 0.0  ;;  %v786_v35 = vmul.f32 0.01, %v716_v32  ;;  %v2170_v36 = vpop.f32.mrb[16].mxu1  ;;  %2191 = vmatmul.mubr.msk.f32.gmra.mrb[12].mxu0 %vm570_vm4, %v801_v31  ;;  %v2594_v28 = vrot.slane %v2507_v26, %v817_v25 }
 0x1d1   : > { %v731_v37 = vadd.f32 %v2170_v36, %v2552_v50  ;;  %v725_v38 = vpop.f32.mrb[17].mxu1  ;;  %v803_v39 = vsel %vm771_vm11, %v721_v29, %v787_v34 }
 0x1d2   : > { %v726_v40 = vadd.f32 %v725_v38, %v2552_v50  ;;  %v802_v41 = vsel %vm770_vm12, %v716_v32, %v786_v35 }
 0x1d3   : > { %vm773_vm13 = vcmp.gt.f32.partialorder %v731_v37, 0.0  ;;  %v789_v42 = vmul.f32 0.01, %v731_v37  ;;  %2193 = vmatprep.mubr.msk.f32.mxu0 %vm570_vm4, %v802_v41 }
 0x1d4   : > { %vm772_vm14 = vcmp.gt.f32.partialorder %v726_v40, 0.0  ;;  %v788_v43 = vmul.f32 0.01, %v726_v40  ;;  %v2173_v44 = vpop.f32.mrb[18].mxu1  ;;  %2194 = vmatmul.mubr.msk.f32.gmra.mrb[14].mxu0 %vm570_vm4, %v803_v39 }
 0x1d5   : > { %v741_v45 = vadd.f32 %v2173_v44, %v2552_v50  ;;  %v735_v46 = vpop.f32.mrb[19].mxu1  ;;  %v805_v27 = vsel %vm773_vm13, %v731_v37, %v789_v42 }
 0x1d6   : > { %v736_v47 = vadd.f32 %v735_v46, %v2552_v50  ;;  %v804_v48 = vsel %vm772_vm14, %v726_v40, %v788_v43 }
 0x1d7   : > { %vm775_vm15 = vcmp.gt.f32.partialorder %v741_v45, 0.0  ;;  %v791_v49 = vmul.f32 0.01, %v741_v45  ;;  %2196 = vmatprep.mubr.msk.f32.mxu0 %vm570_vm4, %v804_v48 }
 0x1d8   : > { %vm774_vm0 = vcmp.gt.f32.partialorder %v736_v47, 0.0  ;;  %v790_v51 = vmul.f32 0.01, %v736_v47  ;;  %v2176_v52 = vpop.f32.mrb[20].mxu1  ;;  %2197 = vmatmul.mubr.msk.f32.gmra.mrb[16].mxu0 %vm570_vm4, %v805_v27 }
 0x1d9   : > { %v751_v53 = vadd.f32 %v2176_v52, %v2552_v50  ;;  %v745_v54 = vpop.f32.mrb[21].mxu1  ;;  %v807_v55 = vsel %vm775_vm15, %v741_v45, %v791_v49 }
 0x1da   : > { %v746_v56 = vadd.f32 %v745_v54, %v2552_v50  ;;  %v806_v57 = vsel %vm774_vm0, %v736_v47, %v790_v51 }
 0x1db   : > { %vm777_vm2 = vcmp.gt.f32.partialorder %v751_v53, 0.0  ;;  %v793_v58 = vmul.f32 0.01, %v751_v53  ;;  %2199 = vmatprep.mubr.msk.f32.mxu0 %vm570_vm4, %v806_v57 }
 0x1dc   : > { %vm776_vm3 = vcmp.gt.f32.partialorder %v746_v56, 0.0  ;;  %v792_v59 = vmul.f32 0.01, %v746_v56  ;;  %v2179_v60 = vpop.f32.mrb[22].mxu1  ;;  %2200 = vmatmul.mubr.msk.f32.gmra.mrb[18].mxu0 %vm570_vm4, %v807_v55 }
 0x1dd   : > { %v761_v61 = vadd.f32 %v2179_v60, %v2552_v50  ;;  %v755_v62 = vpop.f32.mrb[23].mxu1  ;;  %v809_v63 = vsel %vm777_vm2, %v751_v53, %v793_v58 }
 0x1de   : > { %v756_v0 = vadd.f32 %v755_v62, %v2552_v50  ;;  %v808_v1 = vsel %vm776_vm3, %v746_v56, %v792_v59  ;;  %v1309_v50 = vld [vmem:[%s2975_s3 + $0x8] sm:$0xff] }
 0x1df   : > { %vm779_vm5 = vcmp.gt.f32.partialorder %v761_v61, 0.0  ;;  %v795_v2 = vmul.f32 0.01, %v761_v61  ;;  %2202 = vmatprep.mubr.msk.f32.mxu0 %vm570_vm4, %v808_v1  ;;  %v2276_v23 = vpack.c.bf16 %v1309_v50, %v1308_v22 }
 0x1e0   : > { %vm778_vm6 = vcmp.gt.f32.partialorder %v756_v0, 0.0  ;;  %v794_v3 = vmul.f32 0.01, %v756_v0  ;;  %2203 = vmatmul.mubr.msk.f32.gmra.mrb[20].mxu0 %vm570_vm4, %v809_v63 }
 0x1e1   : > { %v811_v20 = vsel %vm779_vm5, %v761_v61, %v795_v2  ;;  %2277 = vmatprep.subr.bf16.mxu0 %v2276_v23 }
 0x1e2   : > { %v810_v21 = vsel %vm778_vm6, %v756_v0, %v794_v3  ;;  %2279 = vmatpush3.bf16.msra.mxu0 %v2276_v23 }
 0x1e3   : > { %2205 = vmatprep.mubr.msk.f32.mxu0 %vm570_vm4, %v810_v21 }
 0x1e4   : > { %2206 = vmatmul.mubr.msk.f32.gmra.mrb[22].mxu0 %vm570_vm4, %v811_v20 }
 0x29b   : > { %v2186_v29 = vpop.f32.mrb[8].mxu0 }
 0x29c   : > { %v939_v30 = vadd.f32 %v2186_v29, %v2594_v28  ;;  %v933_v31 = vpop.f32.mrb[9].mxu0 }
 0x29d   : > { %v934_v32 = vadd.f32 %v933_v31, %v2594_v28 }
 0x29e   : > { %v1029_v33 = vmul.f32 0.01, %v939_v30  ;;  %vm1013_vm7 = vcmp.gt.f32.partialorder %v939_v30, 0.0 }
 0x29f   : > { %vm1012_vm8 = vcmp.gt.f32.partialorder %v934_v32, 0.0  ;;  %v1028_v34 = vmul.f32 0.01, %v934_v32  ;;  %v2189_v35 = vpop.f32.mrb[10].mxu0 }
 0x2a0   : > { %v949_v36 = vadd.f32 %v2189_v35, %v2594_v28  ;;  %v943_v37 = vpop.f32.mrb[11].mxu0  ;;  %v1045_v40 = vsel %vm1013_vm7, %v939_v30, %v1029_v33 }
 0x2a1   : > { %v1044_v38 = vsel %vm1012_vm8, %v934_v32, %v1028_v34  ;;  %v944_v39 = vadd.f32 %v943_v37, %v2594_v28 }
 0x2a2   : > { %2212 = vmatprep.mubr.msk.f32.mxu1 %vm570_vm4, %v1044_v38  ;;  %vm1015_vm9 = vcmp.gt.f32.partialorder %v949_v36, 0.0  ;;  %v1031_v41 = vmul.f32 0.01, %v949_v36 }
 0x2a3   : > { %2213 = vmatmul.mubr.msk.f32.vlgmr.msra.gmra.mrb[24].mxu1 %vm570_vm4, %v1045_v40  ;;  %vm1014_vm10 = vcmp.gt.f32.partialorder %v944_v39, 0.0  ;;  %v1030_v42 = vmul.f32 0.01, %v944_v39  ;;  %v2192_v43 = vpop.f32.mrb[12].mxu0 }
 0x2a4   : > { %v1047_v44 = vsel %vm1015_vm9, %v949_v36, %v1031_v41  ;;  %v959_v45 = vadd.f32 %v2192_v43, %v2594_v28  ;;  %v953_v46 = vpop.f32.mrb[13].mxu0 }
 0x2a5   : > { %v1046_v27 = vsel %vm1014_vm10, %v944_v39, %v1030_v42  ;;  %v954_v47 = vadd.f32 %v953_v46, %v2594_v28 }
 0x2a6   : > { %2215 = vmatprep.mubr.msk.f32.mxu1 %vm570_vm4, %v1046_v27  ;;  %vm1017_vm11 = vcmp.gt.f32.partialorder %v959_v45, 0.0  ;;  %v1033_v48 = vmul.f32 0.01, %v959_v45 }
 0x2a7   : > { %2216 = vmatmul.mubr.msk.f32.gmra.mrb[26].mxu1 %vm570_vm4, %v1047_v44  ;;  %vm1016_vm12 = vcmp.gt.f32.partialorder %v954_v47, 0.0  ;;  %v1032_v49 = vmul.f32 0.01, %v954_v47  ;;  %v2195_v51 = vpop.f32.mrb[14].mxu0 }
 0x2a8   : > { %v969_v52 = vadd.f32 %v2195_v51, %v2594_v28  ;;  %v963_v53 = vpop.f32.mrb[15].mxu0  ;;  %v1049_v54 = vsel %vm1017_vm11, %v959_v45, %v1033_v48 }
 0x2a9   : > { %v964_v55 = vadd.f32 %v963_v53, %v2594_v28  ;;  %v1048_v56 = vsel %vm1016_vm12, %v954_v47, %v1032_v49 }
 0x2aa   : > { %vm1019_vm13 = vcmp.gt.f32.partialorder %v969_v52, 0.0  ;;  %v1035_v57 = vmul.f32 0.01, %v969_v52  ;;  %2218 = vmatprep.mubr.msk.f32.mxu1 %vm570_vm4, %v1048_v56 }
 0x2ab   : > { %vm1018_vm14 = vcmp.gt.f32.partialorder %v964_v55, 0.0  ;;  %v1034_v58 = vmul.f32 0.01, %v964_v55  ;;  %v2198_v59 = vpop.f32.mrb[16].mxu0  ;;  %2219 = vmatmul.mubr.msk.f32.gmra.mrb[28].mxu1 %vm570_vm4, %v1049_v54 }
 0x2ac   : > { %v979_v60 = vadd.f32 %v2198_v59, %v2594_v28  ;;  %v973_v61 = vpop.f32.mrb[17].mxu0  ;;  %v1051_v62 = vsel %vm1019_vm13, %v969_v52, %v1035_v57 }
 0x2ad   : > { %v974_v63 = vadd.f32 %v973_v61, %v2594_v28  ;;  %v1050_v0 = vsel %vm1018_vm14, %v964_v55, %v1034_v58 }
 0x2ae   : > { %vm1021_vm15 = vcmp.gt.f32.partialorder %v979_v60, 0.0  ;;  %v1037_v1 = vmul.f32 0.01, %v979_v60  ;;  %2221 = vmatprep.mubr.msk.f32.mxu1 %vm570_vm4, %v1050_v0 }
 0x2af   : > { %vm1020_vm0 = vcmp.gt.f32.partialorder %v974_v63, 0.0  ;;  %v1036_v2 = vmul.f32 0.01, %v974_v63  ;;  %v2201_v3 = vpop.f32.mrb[18].mxu0  ;;  %2222 = vmatmul.mubr.msk.f32.gmra.mrb[30].mxu1 %vm570_vm4, %v1051_v62 }
 0x2b0   : > { %v989_v20 = vadd.f32 %v2201_v3, %v2594_v28  ;;  %v983_v21 = vpop.f32.mrb[19].mxu0  ;;  %v1053_v22 = vsel %vm1021_vm15, %v979_v60, %v1037_v1 }
 0x2b1   : > { %v984_v50 = vadd.f32 %v983_v21, %v2594_v28  ;;  %v1052_v23 = vsel %vm1020_vm0, %v974_v63, %v1036_v2 }
 0x2b2   : > { %vm1023_vm2 = vcmp.gt.f32.partialorder %v989_v20, 0.0  ;;  %v1039_v25 = vmul.f32 0.01, %v989_v20  ;;  %2224 = vmatprep.mubr.msk.f32.mxu1 %vm570_vm4, %v1052_v23 }
 0x2b3   : > { %vm1022_vm3 = vcmp.gt.f32.partialorder %v984_v50, 0.0  ;;  %v1038_v29 = vmul.f32 0.01, %v984_v50  ;;  %v2204_v30 = vpop.f32.mrb[20].mxu0  ;;  %2225 = vmatmul.mubr.msk.f32.gmra.mrb[32].mxu1 %vm570_vm4, %v1053_v22 }
 0x2b4   : > { %v999_v31 = vadd.f32 %v2204_v30, %v2594_v28  ;;  %v993_v32 = vpop.f32.mrb[21].mxu0  ;;  %v1055_v33 = vsel %vm1023_vm2, %v989_v20, %v1039_v25 }
 0x2b5   : > { %v994_v34 = vadd.f32 %v993_v32, %v2594_v28  ;;  %v1054_v35 = vsel %vm1022_vm3, %v984_v50, %v1038_v29 }
 0x2b6   : > { %vm1025_vm5 = vcmp.gt.f32.partialorder %v999_v31, 0.0  ;;  %v1041_v36 = vmul.f32 0.01, %v999_v31  ;;  %2227 = vmatprep.mubr.msk.f32.mxu1 %vm570_vm4, %v1054_v35 }
 0x2b7   : > { %vm1024_vm6 = vcmp.gt.f32.partialorder %v994_v34, 0.0  ;;  %v1040_v37 = vmul.f32 0.01, %v994_v34  ;;  %v2207_v38 = vpop.f32.mrb[22].mxu0  ;;  %2228 = vmatmul.mubr.msk.f32.gmra.mrb[34].mxu1 %vm570_vm4, %v1055_v33 }
 0x2b8   : > { %v1009_v39 = vadd.f32 %v2207_v38, %v2594_v28  ;;  %v1003_v40 = vpop.f32.mrb[23].mxu0  ;;  %v1057_v41 = vsel %vm1025_vm5, %v999_v31, %v1041_v36 }
 0x2b9   : > { %v1004_v42 = vadd.f32 %v1003_v40, %v2594_v28  ;;  %v1056_v43 = vsel %vm1024_vm6, %v994_v34, %v1040_v37 }
 0x2ba   : > { %vm1027_vm7 = vcmp.gt.f32.partialorder %v1009_v39, 0.0  ;;  %v1043_v44 = vmul.f32 0.01, %v1009_v39  ;;  %2230 = vmatprep.mubr.msk.f32.mxu1 %vm570_vm4, %v1056_v43 }
 0x2bb   : > { %vm1026_vm8 = vcmp.gt.f32.partialorder %v1004_v42, 0.0  ;;  %v1042_v45 = vmul.f32 0.01, %v1004_v42  ;;  %2231 = vmatmul.mubr.msk.f32.gmra.mrb[36].mxu1 %vm570_vm4, %v1057_v41 }
 0x2bc   : > { %v1059_v46 = vsel %vm1027_vm7, %v1009_v39, %v1043_v44 }
 0x2bd   : > { %v1058_v27 = vsel %vm1026_vm8, %v1004_v42, %v1042_v45 }
 0x2be   : > { %2233 = vmatprep.mubr.msk.f32.mxu1 %vm570_vm4, %v1058_v27 }
 0x2bf   : > { %2234 = vmatmul.mubr.msk.f32.gmra.mrb[38].mxu1 %vm570_vm4, %v1059_v46 }
 0x376   : > { %v2214_v6 = vpop.f32.mrb[24].mxu1 }
 0x377   : > { %v1187_v7 = vadd.f32 %v2214_v6, %v2662_v5  ;;  %v1181_v8 = vpop.f32.mrb[25].mxu1 }
 0x378   : > { %v1182_v9 = vadd.f32 %v1181_v8, %v2662_v5 }
 0x379   : > { %v1277_v10 = vmul.f32 0.01, %v1187_v7  ;;  %vm1261_vm9 = vcmp.gt.f32.partialorder %v1187_v7, 0.0 }
 0x37a   : > { %vm1260_vm10 = vcmp.gt.f32.partialorder %v1182_v9, 0.0  ;;  %v1276_v11 = vmul.f32 0.01, %v1182_v9  ;;  %v2217_v12 = vpop.f32.mrb[26].mxu1 }
 0x37b   : > { %v1197_v13 = vadd.f32 %v2217_v12, %v2662_v5  ;;  %v1191_v14 = vpop.f32.mrb[27].mxu1  ;;  %v1293_v17 = vsel %vm1261_vm9, %v1187_v7, %v1277_v10  ;;  %v2018_v7 = vld [vmem:[%s2977_s5] ss:$0 sm:$0xff] }
 0x37c   : > { %v1292_v15 = vsel %vm1260_vm10, %v1182_v9, %v1276_v11  ;;  %v1192_v16 = vadd.f32 %v1191_v14, %v2662_v5 }
 0x37d   : > { %2240 = vmatprep.mubr.msk.f32.mxu0 %vm570_vm4, %v1292_v15  ;;  %vm1263_vm11 = vcmp.gt.f32.partialorder %v1197_v13, 0.0  ;;  %v1279_v18 = vmul.f32 0.01, %v1197_v13  ;;  %v1543_v15 = vpop.permute.xlu0 %1542 }
 0x37e   : > { %2241 = vmatmul.mubr.msk.f32.vlgmr.msra.gmra.mrb[24].mxu0 %vm570_vm4, %v1293_v17  ;;  %vm1262_vm12 = vcmp.gt.f32.partialorder %v1192_v16, 0.0  ;;  %v1278_v19 = vmul.f32 0.01, %v1192_v16  ;;  %v2220_v24 = vpop.f32.mrb[28].mxu1 }
 0x37f   : > { %v1295_v26 = vsel %vm1263_vm11, %v1197_v13, %v1279_v18  ;;  %v1207_v28 = vadd.f32 %v2220_v24, %v2662_v5  ;;  %v1201_v47 = vpop.f32.mrb[29].mxu1  ;;  %vm1766_vm11 = vcmask 31744  }
 0x380   : > { %v1294_v48 = vsel %vm1262_vm12, %v1192_v16, %v1278_v19  ;;  %v1202_v49 = vadd.f32 %v1201_v47, %v2662_v5 }
 0x381   : > { %2243 = vmatprep.mubr.msk.f32.mxu0 %vm570_vm4, %v1294_v48  ;;  %vm1265_vm13 = vcmp.gt.f32.partialorder %v1207_v28, 0.0  ;;  %v1281_v51 = vmul.f32 0.01, %v1207_v28  ;;  %v1545_v47 = vpop.permute.xlu0 %1544 }
 0x382   : > { %2244 = vmatmul.mubr.msk.f32.gmra.mrb[26].mxu0 %vm570_vm4, %v1295_v26  ;;  %vm1264_vm14 = vcmp.gt.f32.partialorder %v1202_v49, 0.0  ;;  %v1280_v52 = vmul.f32 0.01, %v1202_v49  ;;  %v2223_v53 = vpop.f32.mrb[30].mxu1  ;;  %v2705_v26 = vpop.permute.xlu1 %1546 }
 0x383   : > { %v1217_v54 = vadd.f32 %v2223_v53, %v2662_v5  ;;  %v1211_v55 = vpop.f32.mrb[31].mxu1  ;;  %v1297_v56 = vsel %vm1265_vm13, %v1207_v28, %v1281_v51 }
 0x384   : > { %v1212_v57 = vadd.f32 %v1211_v55, %v2662_v5  ;;  %v1296_v58 = vsel %vm1264_vm14, %v1202_v49, %v1280_v52 }
 0x385   : > { %vm1267_vm15 = vcmp.gt.f32.partialorder %v1217_v54, 0.0  ;;  %v1283_v59 = vmul.f32 0.01, %v1217_v54  ;;  %2246 = vmatprep.mubr.msk.f32.mxu0 %vm570_vm4, %v1296_v58 }
 0x386   : > { %vm1266_vm0 = vcmp.gt.f32.partialorder %v1212_v57, 0.0  ;;  %v1282_v60 = vmul.f32 0.01, %v1212_v57  ;;  %v2226_v61 = vpop.f32.mrb[32].mxu1  ;;  %2247 = vmatmul.mubr.msk.f32.gmra.mrb[28].mxu0 %vm570_vm4, %v1297_v56  ;;  %v1549_v55 = vpop.permute.xlu1 %1548 }
 0x387   : > { %v1227_v62 = vadd.f32 %v2226_v61, %v2662_v5  ;;  %v1221_v63 = vpop.f32.mrb[33].mxu1  ;;  %v1299_v0 = vsel %vm1267_vm15, %v1217_v54, %v1283_v59 }
 0x388   : > { %v1222_v1 = vadd.f32 %v1221_v63, %v2662_v5  ;;  %v1298_v2 = vsel %vm1266_vm0, %v1212_v57, %v1282_v60 }
 0x389   : > { %vm1269_vm2 = vcmp.gt.f32.partialorder %v1227_v62, 0.0  ;;  %v1285_v3 = vmul.f32 0.01, %v1227_v62  ;;  %2249 = vmatprep.mubr.msk.f32.mxu0 %vm570_vm4, %v1298_v2 }
 0x38a   : > { %vm1268_vm3 = vcmp.gt.f32.partialorder %v1222_v1, 0.0  ;;  %v1284_v20 = vmul.f32 0.01, %v1222_v1  ;;  %v2229_v21 = vpop.f32.mrb[34].mxu1  ;;  %2250 = vmatmul.mubr.msk.f32.gmra.mrb[30].mxu0 %vm570_vm4, %v1299_v0 }
 0x38b   : > { %v1237_v22 = vadd.f32 %v2229_v21, %v2662_v5  ;;  %v1231_v50 = vpop.f32.mrb[35].mxu1  ;;  %v1301_v23 = vsel %vm1269_vm2, %v1227_v62, %v1285_v3 }
 0x38c   : > { %v1232_v25 = vadd.f32 %v1231_v50, %v2662_v5  ;;  %v1300_v29 = vsel %vm1268_vm3, %v1222_v1, %v1284_v20 }
 0x38d   : > { %vm1271_vm5 = vcmp.gt.f32.partialorder %v1237_v22, 0.0  ;;  %v1287_v30 = vmul.f32 0.01, %v1237_v22  ;;  %2252 = vmatprep.mubr.msk.f32.mxu0 %vm570_vm4, %v1300_v29 }
 0x38e   : > { %vm1270_vm6 = vcmp.gt.f32.partialorder %v1232_v25, 0.0  ;;  %v1286_v31 = vmul.f32 0.01, %v1232_v25  ;;  %v2232_v32 = vpop.f32.mrb[36].mxu1  ;;  %2253 = vmatmul.mubr.msk.f32.gmra.mrb[32].mxu0 %vm570_vm4, %v1301_v23 }
 0x38f   : > { %v1247_v33 = vadd.f32 %v2232_v32, %v2662_v5  ;;  %v1241_v34 = vpop.f32.mrb[37].mxu1  ;;  %v1303_v35 = vsel %vm1271_vm5, %v1237_v22, %v1287_v30  ;;  %v1551_v32 = vpop.permute.xlu0 %1550 }
 0x390   : > { %v1242_v36 = vadd.f32 %v1241_v34, %v2662_v5  ;;  %v1302_v37 = vsel %vm1270_vm6, %v1232_v25, %v1286_v31  ;;  %v2733_v31 = vpop.permute.xlu1 %1552 }
 0x391   : > { %vm1273_vm7 = vcmp.gt.f32.partialorder %v1247_v33, 0.0  ;;  %v1289_v38 = vmul.f32 0.01, %v1247_v33  ;;  %2255 = vmatprep.mubr.msk.f32.mxu0 %vm570_vm4, %v1302_v37 }
 0x392   : > { %vm1272_vm8 = vcmp.gt.f32.partialorder %v1242_v36, 0.0  ;;  %v1288_v39 = vmul.f32 0.01, %v1242_v36  ;;  %v2235_v40 = vpop.f32.mrb[38].mxu1  ;;  %2256 = vmatmul.mubr.msk.f32.gmra.mrb[34].mxu0 %vm570_vm4, %v1303_v35 }
 0x393   : > { %v1257_v41 = vadd.f32 %v2235_v40, %v2662_v5  ;;  %v1251_v42 = vpop.f32.mrb[39].mxu1  ;;  %v1305_v43 = vsel %vm1273_vm7, %v1247_v33, %v1289_v38  ;;  %v2738_v35 = vpop.permute.xlu0 %1554 }
 0x394   : > { %v1252_v44 = vadd.f32 %v1251_v42, %v2662_v5  ;;  %v1304_v45 = vsel %vm1272_vm8, %v1242_v36, %v1288_v39  ;;  %v2736_v34 = vpop.permute.xlu1 %1556 }
 0x395   : > { %vm1275_vm9 = vcmp.gt.f32.partialorder %v1257_v41, 0.0  ;;  %v1291_v46 = vmul.f32 0.01, %v1257_v41  ;;  %2258 = vmatprep.mubr.msk.f32.mxu0 %vm570_vm4, %v1304_v45 }
 0x396   : > { %vm1274_vm10 = vcmp.gt.f32.partialorder %v1252_v44, 0.0  ;;  %v1290_v27 = vmul.f32 0.01, %v1252_v44  ;;  %2259 = vmatmul.mubr.msk.f32.gmra.mrb[36].mxu0 %vm570_vm4, %v1305_v43 }
 0x397   : > { %v1307_v4 = vsel %vm1275_vm9, %v1257_v41, %v1291_v46  ;;  %v2743_v38 = vpop.permute.xlu0 %1558 }
 0x398   : > { %v1306_v6 = vsel %vm1274_vm10, %v1252_v44, %v1290_v27  ;;  %v2741_v37 = vpop.permute.xlu1 %1560 }
 0x399   : > { %2261 = vmatprep.mubr.msk.f32.mxu0 %vm570_vm4, %v1306_v6 }
 0x39a   : > { %2262 = vmatmul.mubr.msk.f32.gmra.mrb[38].mxu0 %vm570_vm4, %v1307_v4  ;;  %vm1831_vm4 = vcmask 7168  }
 0x39b   : > { %v2747_v41 = vpop.permute.xlu0 %1562 }
 0x39c   : > { %v2745_v39 = vpop.permute.xlu1 %1564 }
 0x39f   : > { %v2751_v43 = vpop.permute.xlu0 %1566 }
 0x3a0   : > { %v2749_v42 = vpop.permute.xlu1 %1568 }
 0x3a3   : > { %v2759_v45 = vpop.permute.xlu0 %1570 }
 0x3a4   : > { %v2757_v44 = vpop.permute.xlu1 %1572 }
 0x451   : > { %v2242_v5 = vpop.f32.mrb[24].mxu0 }
 0x452   : > { %v1437_v8 = vadd.f32 %v2242_v5, %v2018_v7  ;;  %v1431_v9 = vpop.f32.mrb[25].mxu0 }
 0x453   : > { %v1432_v10 = vadd.f32 %v2018_v7, %v1431_v9 }
 0x454   : > { %v1512_v11 = vmul.f32 1.442695, %v1437_v8  ;;  %1624 = vrot.lane.b32.xlu1 %v1437_v8, %s2348_s29  ;;  %v1786_v25 = vsel %vm318_vm1, %v1437_v8, 0.0 }
 0x455   : > { %1622 = vrot.lane.b32.xlu0 %v1432_v10, %s2348_s29  ;;  %v2245_v12 = vpop.f32.mrb[26].mxu0  ;;  %v1783_v29 = vsel %vm318_vm1, %v1432_v10, 0.0  ;;  %v1510_v40 = vmul.f32 1.442695, %v1432_v10 }
 0x456   : > { %2292 = vpow2.f32 %v1512_v11  ;;  %v1447_v13 = vadd.f32 %v2245_v12, %v2018_v7  ;;  %v1441_v14 = vpop.f32.mrb[27].mxu0 }
 0x457   : > { %v1442_v30 = vadd.f32 %v2018_v7, %v1441_v14 }
 0x458   : > { %v1516_v16 = vmul.f32 1.442695, %v1447_v13  ;;  %v1792_v36 = vsel %vm318_vm1, %v1447_v13, 0.0 }
 0x459   : > { %v2248_v17 = vpop.f32.mrb[28].mxu0  ;;  %v1789_v33 = vsel %vm318_vm1, %v1442_v30, 0.0  ;;  %v1514_v10 = vmul.f32 1.442695, %v1442_v30 }
 0x45a   : > { %2294 = vpow2.f32 %v1516_v16  ;;  %v2701_v18 = vadd.f32 %v2248_v17, %v2018_v7  ;;  %v1451_v19 = vpop.f32.mrb[29].mxu0 }
 0x45b   : > { %v2703_v24 = vadd.f32 %v2018_v7, %v1451_v19  ;;  %2296 = vpow2.f32 %v1510_v40 }
 0x45c   : > { %v1798_v9 = vsel %vm318_vm1, %v2701_v18, 0.0  ;;  %2298 = vpow2.f32 %v1514_v10 }
 0x45d   : > { %v2251_v28 = vpop.f32.mrb[30].mxu0  ;;  %v1795_v8 = vsel %vm318_vm1, %v2703_v24, 0.0 }
 0x45e   : > { %v2707_v48 = vadd.f32 %v2251_v28, %v2018_v7  ;;  %v1461_v49 = vpop.f32.mrb[31].mxu0 }
 0x45f   : > { %v2709_v51 = vadd.f32 %v2018_v7, %v1461_v49  ;;  %v1520_v49 = vmul.f32 1.442695, %v2701_v18 }
 0x460   : > { %v2293_v52 = vpop.eup %2292 }
 0x461   : > { %v1591_v53 = vmul.f32 %v2293_v52, %v1545_v47  ;;  %v2254_v54 = vpop.f32.mrb[32].mxu0  ;;  %v1801_v28 = vsel %vm318_vm1, %v2709_v51, 0.0  ;;  %v1804_v47 = vsel %vm318_vm1, %v2707_v48, 0.0 }
 0x462   : > { %v2711_v56 = vadd.f32 %v2254_v54, %v2018_v7  ;;  %v1471_v57 = vpop.f32.mrb[33].mxu0 }
 0x463   : > { %v2713_v58 = vadd.f32 %v2018_v7, %v1471_v57 }
 0x464   : > { %v2295_v59 = vpop.eup %2294 }
 0x465   : > { %v2715_v60 = vmul.f32 %v2295_v59, %v1549_v55  ;;  %v2257_v61 = vpop.f32.mrb[34].mxu0  ;;  %v2297_v46 = vpop.eup %2296 }
 0x466   : > { %v2717_v62 = vadd.f32 %v2257_v61, %v2018_v7  ;;  %v1481_v63 = vpop.f32.mrb[35].mxu0  ;;  %v1590_v27 = vmul.f32 %v2297_v46, %v1543_v15  ;;  %v2299_v11 = vpop.eup %2298 }
 0x467   : > { %v2719_v0 = vadd.f32 %v2018_v7, %v1481_v63 }
 0x468   : > { %v1816_v46 = vsel %vm318_vm1, %v2717_v62, 0.0 }
 0x469   : > { %v2260_v1 = vpop.f32.mrb[36].mxu0  ;;  %v1813_v40 = vsel %vm318_vm1, %v2719_v0, 0.0 }
 0x46a   : > { %v2721_v2 = vadd.f32 %v2260_v1, %v2018_v7  ;;  %v1491_v3 = vpop.f32.mrb[37].mxu0  ;;  %v1810_v1 = vsel %vm318_vm1, %v2711_v56, 0.0 }
 0x46b   : > { %v2723_v20 = vadd.f32 %v2018_v7, %v1491_v3  ;;  %v1522_v3 = vmul.f32 1.442695, %v2709_v51 }
 0x46d   : > { %v2263_v21 = vpop.f32.mrb[38].mxu0 }
 0x46e   : > { %v2725_v22 = vadd.f32 %v2263_v21, %v2018_v7  ;;  %v1501_v50 = vpop.f32.mrb[39].mxu0  ;;  %v1524_v21 = vmul.f32 1.442695, %v2707_v48 }
 0x46f   : > { %v2727_v23 = vadd.f32 %v2018_v7, %v1501_v50 }
 0x474   : > { %1787 = vadd.xlane.f32.xlu0 %v1786_v25 }
 0x478   : > { %1784 = vadd.xlane.f32.xlu1 %v1783_v29 }
 0x489   : > { %1628 = vrot.lane.b32.xlu1 %v1447_v13, %s2348_s29  ;;  %v1592_v13 = vmul.f32 %v2299_v11, %v2705_v26  ;;  %v1518_v26 = vmul.f32 1.442695, %v2703_v24  ;;  %v1825_v11 = vsel %vm318_vm1, %v2727_v23, 0.0 }
 0x48a   : > { %1626 = vrot.lane.b32.xlu0 %v1442_v30, %s2348_s29 }
 0x48b   : > { %2300 = vpow2.f32 %v1518_v26 }
 0x48c   : > { %2302 = vpow2.f32 %v1520_v49 }
 0x48d   : > { %2304 = vpow2.f32 %v1522_v3 }
 0x48e   : > { %2306 = vpow2.f32 %v1524_v21 }
 0x495   : > { %v2301_v52 = vpop.eup %2300 }
 0x496   : > { %v1594_v54 = vmul.f32 %v2301_v52, %v1551_v32  ;;  %v2303_v55 = vpop.eup %2302 }
 0x497   : > { %v2305_v50 = vpop.eup %2304 }
 0x498   : > { %v1596_v29 = vmul.f32 %v2305_v50, %v2738_v35  ;;  %v2307_v30 = vpop.eup %2306 }
 0x4a9   : > { %1790 = vadd.xlane.f32.xlu0 %v1789_v33  ;;  %v1597_v33 = vmul.f32 %v2307_v30, %v2736_v34  ;;  %v2324_v30 = vld [vmem:[%s2413_s13] sm:$0xff] }
 0x4ad   : > { %1793 = vadd.xlane.f32.xlu1 %v1792_v36 }
 0x4be   : > { %1632 = vrot.lane.b32.xlu1 %v2701_v18, %s2348_s29  ;;  %v1807_v18 = vsel %vm318_vm1, %v2713_v58, 0.0 }
 0x4bf   : > { %1630 = vrot.lane.b32.xlu0 %v2703_v24, %s2348_s29  ;;  %v1595_v24 = vmul.f32 %v2303_v55, %v2733_v31 }
 0x4c6   : > { %v1625_v4 = vpop.permute.xlu1 %1624 }
 0x4c7   : > { %v2761_v6 = vadd.f32 %v1625_v4, %v1591_v53  ;;  %v1623_v7 = vpop.permute.xlu0 %1622  ;;  %v1822_v4 = vsel %vm318_vm1, %v2721_v2, 0.0 }
 0x4c8   : > { %v2763_v5 = vadd.f32 %v1623_v7, %v1590_v27  ;;  %v1819_v27 = vsel %vm318_vm1, %v2723_v20, 0.0 }
 0x4de   : > { %1796 = vadd.xlane.f32.xlu0 %v1795_v8 }
 0x4e2   : > { %1799 = vadd.xlane.f32.xlu1 %v1798_v9 }
 0x4f3   : > { %1636 = vrot.lane.b32.xlu1 %v2707_v48, %s2348_s29 }
 0x4f4   : > { %1634 = vrot.lane.b32.xlu0 %v2709_v51, %s2348_s29 }
 0x501   : > { %v1788_v12 = vpop.xlane.xlu0 %1787 }
 0x502   : > { %1833 = vst.msk [vmem:[%s2777_s12 + $0x8] sm:$0xff] %vm1831_vm4, %v1788_v12  ;;  %v1828_v12 = vsel %vm318_vm1, %v2725_v22, 0.0 }
 0x505   : > { %v1627_v14 = vpop.permute.xlu0 %1626  ;;  %v1785_v15 = vpop.xlane.xlu1 %1784 }
 0x506   : > { %v2782_v16 = vadd.f32 %v1627_v14, %v1592_v13  ;;  %1832 = vst.msk [vmem:[%s2777_s12] sm:$0xff] %vm1831_vm4, %v1785_v15  ;;  %v1528_v13 = vmul.f32 1.442695, %v2711_v56  ;;  %v1526_v14 = vmul.f32 1.442695, %v2713_v58 }
 0x507   : > { %v1532_v15 = vmul.f32 1.442695, %v2717_v62 }
 0x508   : > { %2308 = vpow2.f32 %v1528_v13 }
 0x509   : > { %v1629_v17 = vpop.permute.xlu1 %1628  ;;  %2310 = vpow2.f32 %v1526_v14 }
 0x50a   : > { %v2787_v19 = vadd.f32 %v1629_v17, %v2715_v60  ;;  %v1530_v17 = vmul.f32 1.442695, %v2719_v0  ;;  %2312 = vpow2.f32 %v1532_v15 }
 0x50c   : > { %2314 = vpow2.f32 %v1530_v17  ;;  %v2331_v17 = vld [vmem:[%s2413_s13 + $0x38] sm:$0xff] }
 0x513   : > { %1802 = vadd.xlane.f32.xlu0 %v1801_v28  ;;  %v1536_v28 = vmul.f32 1.442695, %v2721_v2 }
 0x515   : > { %2316 = vpow2.f32 %v1536_v28 }
 0x517   : > { %1805 = vadd.xlane.f32.xlu1 %v1804_v47 }
 0x528   : > { %1640 = vrot.lane.b32.xlu1 %v2711_v56, %s2348_s29  ;;  %v1534_v56 = vmul.f32 1.442695, %v2723_v20 }
 0x529   : > { %1638 = vrot.lane.b32.xlu0 %v2713_v58, %s2348_s29  ;;  %v2309_v58 = vpop.eup %2308 }
 0x52a   : > { %2318 = vpow2.f32 %v1534_v56  ;;  %v2332_v56 = vld [vmem:[%s2413_s13 + $0x40] sm:$0xff] }
 0x536   : > { %v1791_v53 = vpop.xlane.xlu0 %1790 }
 0x537   : > { %1834 = vst.msk [vmem:[%s2777_s12 + $0x10] sm:$0xff] %vm1831_vm4, %v1791_v53 }
 0x53a   : > { %v1631_v57 = vpop.permute.xlu0 %1630  ;;  %v1794_v59 = vpop.xlane.xlu1 %1793 }
 0x53b   : > { %v2801_v60 = vadd.f32 %v1631_v57, %v1594_v54  ;;  %1835 = vst.msk [vmem:[%s2777_s12 + $0x18] sm:$0xff] %vm1831_vm4, %v1794_v59 }
 0x53e   : > { %v1633_v61 = vpop.permute.xlu1 %1632 }
 0x53f   : > { %v1675_v63 = vadd.f32 %v1633_v61, %v1595_v24  ;;  %v1538_v61 = vmul.f32 1.442695, %v2727_v23 }
 0x541   : > { %2320 = vpow2.f32 %v1538_v61 }
 0x548   : > { %1808 = vadd.xlane.f32.xlu0 %v1807_v18 }
 0x54c   : > { %1811 = vadd.xlane.f32.xlu1 %v1810_v1 }
 0x55d   : > { %1644 = vrot.lane.b32.xlu1 %v2717_v62, %s2348_s29  ;;  %v2311_v62 = vpop.eup %2310 }
 0x55e   : > { %1642 = vrot.lane.b32.xlu0 %v2719_v0, %s2348_s29 }
 0x56b   : > { %v1797_v25 = vpop.xlane.xlu0 %1796 }
 0x56c   : > { %1836 = vst.msk [vmem:[%s2777_s12 + $0x20] sm:$0xff] %vm1831_vm4, %v1797_v25 }
 0x56f   : > { %v1635_v31 = vpop.permute.xlu0 %1634  ;;  %v1800_v51 = vpop.xlane.xlu1 %1799 }
 0x570   : > { %v1676_v32 = vadd.f32 %v1635_v31, %v1596_v29  ;;  %1837 = vst.msk [vmem:[%s2777_s12 + $0x28] sm:$0xff] %vm1831_vm4, %v1800_v51 }
 0x573   : > { %v1637_v36 = vpop.permute.xlu1 %1636 }
 0x574   : > { %v1677_v48 = vadd.f32 %v1637_v36, %v1597_v33  ;;  %v2325_v33 = vld [vmem:[%s2413_s13 + $0x8] sm:$0xff] }
 0x57d   : > { %1814 = vadd.xlane.f32.xlu0 %v1813_v40 }
 0x581   : > { %1817 = vadd.xlane.f32.xlu1 %v1816_v46 }
 0x592   : > { %1648 = vrot.lane.b32.xlu1 %v2721_v2, %s2348_s29  ;;  %v1599_v2 = vmul.f32 %v2309_v58, %v2741_v37 }
 0x593   : > { %1646 = vrot.lane.b32.xlu0 %v2723_v20, %s2348_s29  ;;  %v2313_v20 = vpop.eup %2312 }
 0x5a0   : > { %v1803_v35 = vpop.xlane.xlu0 %1802 }
 0x5a1   : > { %1838 = vst.msk [vmem:[%s2777_s12 + $0x30] sm:$0xff] %vm1831_vm4, %v1803_v35 }
 0x5a4   : > { %v1806_v34 = vpop.xlane.xlu1 %1805  ;;  %v1639_v7 = vpop.permute.xlu0 %1638 }
 0x5a5   : > { %1839 = vst.msk [vmem:[%s2777_s12 + $0x38] sm:$0xff] %vm1831_vm4, %v1806_v34  ;;  %v2327_v34 = vld [vmem:[%s2413_s13 + $0x28] sm:$0xff] }
 0x5a8   : > { %v1641_v8 = vpop.permute.xlu1 %1640 }
 0x5b2   : > { %1820 = vadd.xlane.f32.xlu0 %v1819_v27 }
 0x5b6   : > { %1823 = vadd.xlane.f32.xlu1 %v1822_v4  ;;  %v2328_v4 = vld [vmem:[%s2413_s13 + $0x10] sm:$0xff] }
 0x5c7   : > { %1652 = vrot.lane.b32.xlu1 %v2725_v22, %s2348_s29 }
 0x5c8   : > { %1650 = vrot.lane.b32.xlu0 %v2727_v23, %s2348_s29 }
 0x5d5   : > { %v1809_v9 = vpop.xlane.xlu0 %1808 }
 0x5d6   : > { %1840 = vst.msk [vmem:[%s2777_s12 + $0x40] sm:$0xff] %vm1831_vm4, %v1809_v9 }
 0x5d9   : > { %v1812_v10 = vpop.xlane.xlu1 %1811  ;;  %v1643_v0 = vpop.permute.xlu0 %1642 }
 0x5da   : > { %1841 = vst.msk [vmem:[%s2777_s12 + $0x48] sm:$0xff] %vm1831_vm4, %v1812_v10  ;;  %v2329_v10 = vld [vmem:[%s2413_s13 + $0x20] sm:$0xff] }
 0x5dd   : > { %v1645_v47 = vpop.permute.xlu1 %1644 }
 0x5e7   : > { %1826 = vadd.xlane.f32.xlu0 %v1825_v11 }
 0x5eb   : > { %1829 = vadd.xlane.f32.xlu1 %v1828_v12  ;;  %v2330_v12 = vld [vmem:[%s2413_s13 + $0x30] sm:$0xff] }
 0x5fc   : > { %1704 = vrot.lane.b32.xlu1 %v2761_v6, %s2349_s14  ;;  %v1598_v6 = vmul.f32 %v2311_v62, %v2743_v38 }
 0x5fd   : > { %1702 = vrot.lane.b32.xlu0 %v2763_v5, %s2349_s14  ;;  %v2315_v5 = vpop.eup %2314 }
 0x5fe   : > { %v1678_v49 = vadd.f32 %v1639_v7, %v1598_v6  ;;  %v2317_v37 = vpop.eup %2316  ;;  %v1600_v52 = vmul.f32 %v2315_v5, %v2747_v41  ;;  %v2334_v6 = vld [vmem:[%s2413_s13 + $0x50] sm:$0xff] }
 0x5ff   : > { %v2319_v38 = vpop.eup %2318  ;;  %v1603_v59 = vmul.f32 %v2317_v37, %v2749_v42 }
 0x600   : > { %1712 = vrot.lane.b32.xlu1 %v1675_v63, %s2349_s14  ;;  %v1680_v55 = vadd.f32 %v1643_v0, %v1600_v52  ;;  %v1540_v63 = vmul.f32 1.442695, %v2725_v22  ;;  %v2321_v42 = vpop.eup %2320 }
 0x601   : > { %1708 = vrot.lane.b32.xlu0 %v2787_v19, %s2349_s14  ;;  %v1679_v19 = vadd.f32 %v1641_v8, %v1599_v2  ;;  %v1604_v18 = vmul.f32 %v2321_v42, %v2759_v45  ;;  %v2333_v2 = vld [vmem:[%s2413_s13 + $0x48] sm:$0xff] }
 0x602   : > { %2322 = vpow2.f32 %v1540_v63 }
 0x604   : > { %1710 = vrot.lane.b32.xlu1 %v2801_v60, %s2349_s14 }
 0x605   : > { %1706 = vrot.lane.b32.xlu0 %v2782_v16, %s2349_s14  ;;  %v1601_v16 = vmul.f32 %v2313_v20, %v2745_v39  ;;  %v1602_v39 = vmul.f32 %v2319_v38, %v2751_v43  ;;  %v2337_v38 = vld [vmem:[%s2413_s13 + $0x68] sm:$0xff] }
 0x607   : > { %v1681_v53 = vadd.f32 %v1645_v47, %v1601_v16  ;;  %v2336_v16 = vld [vmem:[%s2413_s13 + $0x60] sm:$0xff] }
 0x608   : > { %1716 = vrot.lane.b32.xlu1 %v1677_v48, %s2349_s14  ;;  %v2326_v48 = vld [vmem:[%s2413_s13 + $0x18] sm:$0xff] }
 0x609   : > { %1714 = vrot.lane.b32.xlu0 %v1676_v32, %s2349_s14 }
 0x60a   : > { %v1815_v26 = vpop.xlane.xlu0 %1814 }
 0x60b   : > { %1842 = vst.msk [vmem:[%s2777_s12 + $0x50] sm:$0xff] %vm1831_vm4, %v1815_v26  ;;  %v2335_v26 = vld [vmem:[%s2413_s13 + $0x58] sm:$0xff] }
 0x60c   : > { %1720 = vrot.lane.b32.xlu1 %v1679_v19, %s2349_s14  ;;  %v2323_v1 = vpop.eup %2322 }
 0x60d   : > { %1718 = vrot.lane.b32.xlu0 %v1678_v49, %s2349_s14  ;;  %v1605_v22 = vmul.f32 %v2323_v1, %v2757_v44 }
 0x60e   : > { %v1818_v54 = vpop.xlane.xlu1 %1817  ;;  %v1647_v57 = vpop.permute.xlu0 %1646 }
 0x60f   : > { %1843 = vst.msk [vmem:[%s2777_s12 + $0x58] sm:$0xff] %vm1831_vm4, %v1818_v54  ;;  %v1682_v41 = vadd.f32 %v1647_v57, %v1602_v39  ;;  %v2339_v39 = vld [vmem:[%s2413_s13 + $0x78] sm:$0xff] }
 0x610   : > { %1724 = vrot.lane.b32.xlu1 %v1681_v53, %s2349_s14 }
 0x611   : > { %1722 = vrot.lane.b32.xlu0 %v1680_v55, %s2349_s14  ;;  %v2338_v55 = vld [vmem:[%s2413_s13 + $0x70] sm:$0xff] }
 0x612   : > { %v1649_v60 = vpop.permute.xlu1 %1648 }
 0x613   : > { %v1683_v24 = vadd.f32 %v1649_v60, %v1603_v59 }
 0x615   : > { %1728 = vrot.lane.b32.xlu1 %v1683_v24, %s2349_s14  ;;  %1726 = vrot.lane.b32.xlu0 %v1682_v41, %s2349_s14 }
 0x63f   : > { %v1821_v43 = vpop.xlane.xlu0 %1820 }
 0x640   : > { %1844 = vst.msk [vmem:[%s2777_s12 + $0x60] sm:$0xff] %vm1831_vm4, %v1821_v43 }
 0x643   : > { %v1651_v3 = vpop.permute.xlu0 %1650  ;;  %v1824_v21 = vpop.xlane.xlu1 %1823 }
 0x644   : > { %v1684_v50 = vadd.f32 %v1651_v3, %v1604_v18  ;;  %1845 = vst.msk [vmem:[%s2777_s12 + $0x68] sm:$0xff] %vm1831_vm4, %v1824_v21 }
 0x646   : > { %1730 = vrot.lane.b32.xlu0 %v1684_v50, %s2349_s14 }
 0x647   : > { %v1653_v23 = vpop.permute.xlu1 %1652 }
 0x648   : > { %v1685_v25 = vadd.f32 %v1653_v23, %v1605_v22 }
 0x64a   : > { %1732 = vrot.lane.b32.xlu1 %v1685_v25, %s2349_s14 }
 0x674   : > { %v1827_v29 = vpop.xlane.xlu0 %1826 }
 0x675   : > { %1846 = vst.msk [vmem:[%s2777_s12 + $0x70] sm:$0xff] %vm1831_vm4, %v1827_v29 }
 0x678   : > { %v1830_v44 = vpop.xlane.xlu1 %1829  ;;  %v1703_v45 = vpop.permute.xlu0 %1702 }
 0x679   : > { %1847 = vst.msk [vmem:[%s2777_s12 + $0x78] sm:$0xff] %vm1831_vm4, %v1830_v44  ;;  %v1750_v31 = vsel %vm318_vm1, %v2324_v30, %v1703_v45 }
 0x67a   : > { %1767 = vst.msk [vmem:[%s2901_s17] sm:$0xff] %vm1766_vm11, %v1750_v31 }
 0x67c   : > { %v1705_v51 = vpop.permute.xlu1 %1704  ;;  %v1709_v32 = vpop.permute.xlu0 %1708 }
 0x67d   : > { %v1751_v36 = vsel %vm318_vm1, %v2325_v33, %v1705_v51  ;;  %v1753_v40 = vsel %vm318_vm1, %v2326_v48, %v1709_v32 }
 0x67e   : > { %1768 = vst.msk [vmem:[%s2901_s17 + $0x8] sm:$0xff] %vm1766_vm11, %v1751_v36  ;;  %1770 = vst.msk [vmem:[%s2901_s17 + $0x18] sm:$0xff] %vm1766_vm11, %v1753_v40 }
 0x680   : > { %v1713_v46 = vpop.permute.xlu1 %1712  ;;  %v1707_v35 = vpop.permute.xlu0 %1706 }
 0x681   : > { %v1755_v27 = vsel %vm318_vm1, %v2327_v34, %v1713_v46  ;;  %v1752_v7 = vsel %vm318_vm1, %v2328_v4, %v1707_v35 }
 0x682   : > { %1772 = vst.msk [vmem:[%s2901_s17 + $0x28] sm:$0xff] %vm1766_vm11, %v1755_v27  ;;  %1769 = vst.msk [vmem:[%s2901_s17 + $0x10] sm:$0xff] %vm1766_vm11, %v1752_v7 }
 0x684   : > { %v1711_v8 = vpop.permute.xlu1 %1710  ;;  %v1715_v9 = vpop.permute.xlu0 %1714 }
 0x685   : > { %v1754_v11 = vsel %vm318_vm1, %v2329_v10, %v1711_v8  ;;  %v1756_v13 = vsel %vm318_vm1, %v2330_v12, %v1715_v9 }
 0x686   : > { %1771 = vst.msk [vmem:[%s2901_s17 + $0x20] sm:$0xff] %vm1766_vm11, %v1754_v11  ;;  %1773 = vst.msk [vmem:[%s2901_s17 + $0x30] sm:$0xff] %vm1766_vm11, %v1756_v13 }
 0x688   : > { %v1717_v14 = vpop.permute.xlu1 %1716  ;;  %v1719_v15 = vpop.permute.xlu0 %1718 }
 0x689   : > { %v1757_v28 = vsel %vm318_vm1, %v2331_v17, %v1717_v14  ;;  %v1758_v58 = vsel %vm318_vm1, %v2332_v56, %v1719_v15 }
 0x68a   : > { %1774 = vst.msk [vmem:[%s2901_s17 + $0x38] sm:$0xff] %vm1766_vm11, %v1757_v28  ;;  %1775 = vst.msk [vmem:[%s2901_s17 + $0x40] sm:$0xff] %vm1766_vm11, %v1758_v58 }
 0x68c   : > { %v1721_v62 = vpop.permute.xlu1 %1720  ;;  %v1723_v0 = vpop.permute.xlu0 %1722 }
 0x68d   : > { %v1759_v20 = vsel %vm318_vm1, %v2333_v2, %v1721_v62  ;;  %v1760_v5 = vsel %vm318_vm1, %v2334_v6, %v1723_v0 }
 0x68e   : > { %1776 = vst.msk [vmem:[%s2901_s17 + $0x48] sm:$0xff] %vm1766_vm11, %v1759_v20  ;;  %1777 = vst.msk [vmem:[%s2901_s17 + $0x50] sm:$0xff] %vm1766_vm11, %v1760_v5 }
 0x690   : > { %v1725_v19 = vpop.permute.xlu1 %1724  ;;  %v1727_v47 = vpop.permute.xlu0 %1726 }
 0x691   : > { %v1761_v49 = vsel %vm318_vm1, %v2335_v26, %v1725_v19  ;;  %v1762_v37 = vsel %vm318_vm1, %v2336_v16, %v1727_v47 }
 0x692   : > { %1778 = vst.msk [vmem:[%s2901_s17 + $0x58] sm:$0xff] %vm1766_vm11, %v1761_v49  ;;  %1779 = vst.msk [vmem:[%s2901_s17 + $0x60] sm:$0xff] %vm1766_vm11, %v1762_v37 }
 0x694   : > { %v1729_v52 = vpop.permute.xlu1 %1728 }
 0x695   : > { %v1763_v53 = vsel %vm318_vm1, %v2337_v38, %v1729_v52 }
 0x696   : > { %1780 = vst.msk [vmem:[%s2901_s17 + $0x68] sm:$0xff] %vm1766_vm11, %v1763_v53 }
 0x6b8   : > { %v1731_v54 = vpop.permute.xlu0 %1730 }
 0x6b9   : > { %v1764_v57 = vsel %vm318_vm1, %v2338_v55, %v1731_v54 }
 0x6ba   : > { %1781 = vst.msk [vmem:[%s2901_s17 + $0x70] sm:$0xff] %vm1766_vm11, %v1764_v57 }
 0x6bc   : > { %v1733_v59 = vpop.permute.xlu1 %1732 }
 0x6bd   : > { %v1765_v60 = vsel %vm318_vm1, %v2339_v39, %v1733_v59 }
 0x6be   : > { %1782 = vst.msk [vmem:[%s2901_s17 + $0x78] sm:$0xff] %vm1766_vm11, %v1765_v60 }
 0x6bf PF: > { %s18_s24 = sadd.s32 1, %s2346_s24  }
 0x6c0   : > { %p15_p4 = scmp.ge.s32.totalorder %s18_s24, 4  }
 0x6c2   :  { %17 = sbr.rel (!%p15_p4) target bundleno = 1 (0x1), region = 88 }

</bundles_post_ra>
